<compile_context>
chip_gen: v7x
topology: tpu7x:2x2x1
jax: 0.10.0
libtpu: 0.0.40
codegen_flags: <defaults>
</compile_context>

<pallas_src>
import jax
import jax.numpy as jnp
import numpy as np
from jax.experimental import pallas as pl
from jax.experimental.pallas import tpu as pltpu


def _acc_dtype():
    """bf16 max-accumulator on bf16-VALU chips (v6e/v7x), f32 on v5e."""
    try:
        kind = jax.devices()[0].device_kind.lower()
    except Exception:
        kind = ""
    return jnp.float32 if "v5" in kind else jnp.bfloat16


# ----------------------------------------------------------------------------
# Fused kernel: conv1/2/3 (1x1 convs as matmuls) + running global max over
# points + (on the last point step) hoisted relu(g+b3) and the fc head.
# Grid = (B, num_n); the point axis is the innermost "arbitrary" axis and the
# (1, 1024) VMEM scratch is the per-batch running-max accumulator.
# ----------------------------------------------------------------------------
def _tnet_kernel(x_ref, w1_ref, b1_ref, w2_ref, b2_ref, w3_ref, b3_ref,
                 wf1_ref, bf1_ref, wf2_ref, bf2_ref, wf3_ref, bf3_ref,
                 o_ref, acc_ref):
    x = x_ref[0]                                           # (8, n_tile) bf16

    # conv1 + folded BN + ReLU: contract channel dim (dim 0 of both operands)
    #   (8, n_tile) . (8, 64) -> (n_tile, 64)
    h = jax.lax.dot_general(
        x, w1_ref[...], (((0,), (0,)), ((), ())),
        preferred_element_type=jnp.float32)
    h = jnp.maximum(h + b1_ref[...], 0.0).astype(jnp.bfloat16)

    # conv2 + folded BN + ReLU: (n_tile, 64) @ (64, 128)
    h = jnp.dot(h, w2_ref[...], preferred_element_type=jnp.float32)
    h = jnp.maximum(h + b2_ref[...], 0.0).astype(jnp.bfloat16)

    # conv3: RAW matmul only; bias + ReLU hoisted past the global max
    # (max_p relu(h[p,c] + b3[c]) == relu(max_p h[p,c] + b3[c])).
    h = jnp.dot(h, w3_ref[...], preferred_element_type=jnp.float32)
    h = h.astype(acc_ref.dtype)                            # bf16 on v6e/v7x

    @pl.when(pl.program_id(1) == 0)
    def _():
        acc_ref[...] = jnp.full(acc_ref.shape, -jnp.inf, dtype=acc_ref.dtype)

    acc_ref[...] = jnp.maximum(acc_ref[...],
                               jnp.max(h, axis=0, keepdims=True))

    # Last point step for this batch: hoisted conv3 bias/ReLU + fc head.
    @pl.when(pl.program_id(1) == pl.num_programs(1) - 1)
    def _():
        g = jnp.maximum(acc_ref[...].astype(jnp.float32) + b3_ref[...], 0.0)
        g = g.astype(jnp.bfloat16)                         # (1, 1024)
        t = jnp.dot(g, wf1_ref[...], preferred_element_type=jnp.float32)
        t = jnp.maximum(t + bf1_ref[...], 0.0).astype(jnp.bfloat16)
        t = jnp.dot(t, wf2_ref[...], preferred_element_type=jnp.float32)
        t = jnp.maximum(t + bf2_ref[...], 0.0).astype(jnp.bfloat16)
        v = jnp.dot(t, wf3_ref[...],
                    preferred_element_type=jnp.float32) + bf3_ref[...]
        o_ref[0] = v                                       # (1, 3)


def tnet_forward_pallas(x_bcn, params, *, n_tile_target=2048):
    """x_bcn: (B, 3, N) float32 -> (B, 3, 3) float32 (eval-mode BN folded)."""
    (w1, b1, w2, b2, w3, b3,
     wf1, bf1, wf2, bf2, wf3, bf3) = params
    B, C, N = x_bcn.shape
    assert C == 3

    acc_dtype = _acc_dtype()

    # Point tiling: at most n_tile_target per step, rounded up to a lane
    # multiple of 128, chosen to minimize padding.
    num_n = -(-N // n_tile_target)                  # cdiv
    per = -(-N // num_n)
    n_tile = -(-per // 128) * 128
    n_pad = n_tile * num_n

    bf16 = jnp.bfloat16
    x = x_bcn.astype(bf16)
    if n_pad != N:
        # Pad by replicating the first point: leaves the global max unchanged.
        pad = jnp.broadcast_to(x[:, :, :1], (B, C, n_pad - N))
        x = jnp.concatenate([x, pad], axis=2)
    # Zero-pad the channel dim to 8 -> clean (8,128)-tiled conv1 MXU operand.
    x = jnp.pad(x, ((0, 0), (0, 8 - C), (0, 0)))
    w1p = jnp.pad(w1, ((0, 8 - C), (0, 0))).astype(bf16)

    conv_w = (w1p, b1, w2.astype(bf16), b2, w3.astype(bf16), b3)
    fc_w = (wf1.astype(bf16), bf1, wf2.astype(bf16), bf2,
            wf3.astype(bf16), bf3)

    def const_spec(p):
        return pl.BlockSpec(p.shape, lambda b, n: (0,) * p.ndim)

    v = pl.pallas_call(
        _tnet_kernel,
        out_shape=jax.ShapeDtypeStruct((B, 1, 3), jnp.float32),
        grid_spec=pltpu.PrefetchScalarGridSpec(
            num_scalar_prefetch=0,
            grid=(B, num_n),                               # reduction axis last
            in_specs=[pl.BlockSpec((1, 8, n_tile), lambda b, n: (b, 0, n))]
                     + [const_spec(p) for p in conv_w + fc_w],
            out_specs=pl.BlockSpec((1, 1, 3), lambda b, n: (b, 0, 0)),
            scratch_shapes=[pltpu.VMEM((1, 1024), acc_dtype)],
        ),
        compiler_params=pltpu.CompilerParams(
            dimension_semantics=("parallel", "arbitrary"),
            vmem_limit_bytes=32 * 1024 * 1024),
    )(x, *conv_w, *fc_w)

    v = v[:, 0, :]                                         # (B, 3)
    # torch.diag_embed: trivial XLA glue (avoids masked 3-wide in-kernel work)
    return v[:, :, None] * jnp.eye(3, dtype=v.dtype)[None, :, :]


# ----------------------------------------------------------------------------
# Deterministic parameter construction + BatchNorm (eval mode) folding.
# ----------------------------------------------------------------------------
def _make_params(key):
    def nrm(k, shape, scale=0.1):
        return scale * jax.random.normal(k, shape, dtype=jnp.float32)

    keys = jax.random.split(key, 32)
    ki = iter(keys)

    def layer(c_in, c_out, with_bn):
        w = nrm(next(ki), (c_out, c_in))          # PyTorch weight layout (out, in)
        b = nrm(next(ki), (c_out,))
        if with_bn:
            gamma = 1.0 + nrm(next(ki), (c_out,))
            beta = nrm(next(ki), (c_out,))
            rmean = nrm(next(ki), (c_out,))
            rvar = 1.0 + jnp.abs(nrm(next(ki), (c_out,)))
            eps = 1e-5
            scale = gamma / jnp.sqrt(rvar + eps)
            w_eff = w * scale[:, None]
            b_eff = (b - rmean) * scale + beta
        else:
            w_eff, b_eff = w, b
        # kernels consume (in, out) weights and (1, out) biases
        return w_eff.T, b_eff.reshape(1, c_out)

    dims = [(3, 64, True), (64, 128, True), (128, 1024, True),
            (1024, 512, True), (512, 256, True), (256, 3, False)]
    params = []
    for c_in, c_out, bn in dims:
        w, b = layer(c_in, c_out, bn)
        params += [w, b]
    return tuple(params)


def tnet_forward_ref(x_bcn, params):
    """Pure-JAX reference mirroring the kernel's bf16-operand / f32-accumulate
    arithmetic, the hoisted conv3 bias/ReLU, and the accumulator dtype."""
    (w1, b1, w2, b2, w3, b3,
     wf1, bf1, wf2, bf2, wf3, bf3) = params
    acc_dtype = _acc_dtype()
    q = lambda a: a.astype(jnp.bfloat16).astype(jnp.float32)
    hi = jax.lax.Precision.HIGHEST
    x = jnp.transpose(q(x_bcn), (0, 2, 1))                 # (B, N, 3)
    h = jax.nn.relu(jnp.matmul(x, q(w1), precision=hi) + b1)
    h = jax.nn.relu(jnp.matmul(q(h), q(w2), precision=hi) + b2)
    h = jnp.matmul(q(h), q(w3), precision=hi)              # raw conv3
    g = jnp.max(h.astype(acc_dtype).astype(jnp.float32), axis=1)   # (B, 1024)
    g = jax.nn.relu(g + b3)                                 # hoisted bias+ReLU
    h = jax.nn.relu(jnp.matmul(q(g), q(wf1), precision=hi) + bf1)
    h = jax.nn.relu(jnp.matmul(q(h), q(wf2), precision=hi) + bf2)
    v = jnp.matmul(q(h), q(wf3), precision=hi) + bf3        # (B, 3)
    return v[:, :, None] * jnp.eye(3, dtype=v.dtype)[None, :, :]


if __name__ == "__main__":
    key = jax.random.PRNGKey(0)
    kx, kp, kx2 = jax.random.split(key, 3)

    params = _make_params(kp)
    fwd = jax.jit(tnet_forward_pallas)

    # Small shape: B=2, C=3 (xyz), N=16 points (single N tile, padded to 128).
    x_small = jax.random.normal(kx, (2, 3, 16), dtype=jnp.float32)
    out = jax.block_until_ready(fwd(x_small, params))
    np.testing.assert_allclose(np.asarray(out),
                               np.asarray(tnet_forward_ref(x_small, params)),
                               rtol=5e-3, atol=5e-3)
    assert out.shape == (2, 3, 3)

    # Multi-tile point count: exercises padding + the running-max reduction axis.
    x_big = jax.random.normal(kx2, (2, 3, 2500), dtype=jnp.float32)
    out2 = jax.block_until_ready(fwd(x_big, params))
    np.testing.assert_allclose(np.asarray(out2),
                               np.asarray(tnet_forward_ref(x_big, params)),
                               rtol=5e-3, atol=5e-3)

    print("KERNEL_OK")
</pallas_src>

<mosaic_0001>
module attributes {stable_mosaic.version = 11 : i64} {
  func.func @_tnet_kernel(%arg0: i32, %arg1: i32, %arg2: memref<1x8x128xbf16, #tpu.memory_space<vmem>>, %arg3: memref<8x64xbf16, #tpu.memory_space<vmem>>, %arg4: memref<1x64xf32, #tpu.memory_space<vmem>>, %arg5: memref<64x128xbf16, #tpu.memory_space<vmem>>, %arg6: memref<1x128xf32, #tpu.memory_space<vmem>>, %arg7: memref<128x1024xbf16, #tpu.memory_space<vmem>>, %arg8: memref<1x1024xf32, #tpu.memory_space<vmem>>, %arg9: memref<1024x512xbf16, #tpu.memory_space<vmem>>, %arg10: memref<1x512xf32, #tpu.memory_space<vmem>>, %arg11: memref<512x256xbf16, #tpu.memory_space<vmem>>, %arg12: memref<1x256xf32, #tpu.memory_space<vmem>>, %arg13: memref<256x3xbf16, #tpu.memory_space<vmem>>, %arg14: memref<1x3xf32, #tpu.memory_space<vmem>>, %arg15: memref<1x1x3xf32, #tpu.memory_space<vmem>>, %arg16: memref<1x1024xbf16, #tpu.memory_space<vmem>>) attributes {dimension_semantics = [#tpu.dimension_semantics<parallel>, #tpu.dimension_semantics<arbitrary>], iteration_bounds = array<i64: 2, 1>, scalar_prefetch = 0 : i64, scratch_operands = 1 : i64, tpu.core_type = #tpu.core_type<tc>, window_params = [{transform_indices = @transform_0, window_bounds = array<i64: 1, 8, 128>}, {pipeline_mode = #tpu.pipeline_mode<synchronous>, transform_indices = @transform_1, window_bounds = array<i64: 8, 64>}, {pipeline_mode = #tpu.pipeline_mode<synchronous>, transform_indices = @transform_2, window_bounds = array<i64: 1, 64>}, {pipeline_mode = #tpu.pipeline_mode<synchronous>, transform_indices = @transform_3, window_bounds = array<i64: 64, 128>}, {pipeline_mode = #tpu.pipeline_mode<synchronous>, transform_indices = @transform_4, window_bounds = array<i64: 1, 128>}, {pipeline_mode = #tpu.pipeline_mode<synchronous>, transform_indices = @transform_5, window_bounds = array<i64: 128, 1024>}, {pipeline_mode = #tpu.pipeline_mode<synchronous>, transform_indices = @transform_6, window_bounds = array<i64: 1, 1024>}, {pipeline_mode = #tpu.pipeline_mode<synchronous>, transform_indices = @transform_7, window_bounds = array<i64: 1024, 512>}, {pipeline_mode = #tpu.pipeline_mode<synchronous>, transform_indices = @transform_8, window_bounds = array<i64: 1, 512>}, {pipeline_mode = #tpu.pipeline_mode<synchronous>, transform_indices = @transform_9, window_bounds = array<i64: 512, 256>}, {pipeline_mode = #tpu.pipeline_mode<synchronous>, transform_indices = @transform_10, window_bounds = array<i64: 1, 256>}, {pipeline_mode = #tpu.pipeline_mode<synchronous>, transform_indices = @transform_11, window_bounds = array<i64: 256, 3>}, {pipeline_mode = #tpu.pipeline_mode<synchronous>, transform_indices = @transform_12, window_bounds = array<i64: 1, 3>}, {transform_indices = @transform_13, window_bounds = array<i64: 1, 1, 3>}]} {
    %c0 = arith.constant 0 : index
    %c0_0 = arith.constant 0 : index
    %c0_1 = arith.constant 0 : index
    %0 = vector.load %arg2[%c0, %c0_0, %c0_1] : memref<1x8x128xbf16, #tpu.memory_space<vmem>>, vector<1x8x128xbf16>
    %1 = vector.shape_cast %0 : vector<1x8x128xbf16> to vector<8x128xbf16>
    %c0_2 = arith.constant 0 : index
    %c0_3 = arith.constant 0 : index
    %2 = vector.load %arg3[%c0_2, %c0_3] : memref<8x64xbf16, #tpu.memory_space<vmem>>, vector<8x64xbf16>
    %cst = arith.constant dense<0.000000e+00> : vector<128x64xf32>
    %3 = tpu.matmul %1, %2, %cst {dimension_numbers = #tpu.dot_dimension_numbers<[0], [0], [1], [1], [0, 1, 1, 1], [], []>} : vector<8x128xbf16>, vector<8x64xbf16>, vector<128x64xf32> -> vector<128x64xf32>
    %c0_4 = arith.constant 0 : index
    %c0_5 = arith.constant 0 : index
    %4 = vector.load %arg4[%c0_4, %c0_5] : memref<1x64xf32, #tpu.memory_space<vmem>>, vector<1x64xf32>
    %5 = vector.broadcast %4 : vector<1x64xf32> to vector<128x64xf32>
    %6 = arith.addf %3, %5 : vector<128x64xf32>
    %cst_6 = arith.constant 0.000000e+00 : f32
    %7 = vector.broadcast %cst_6 : f32 to vector<128x64xf32>
    %8 = arith.maximumf %6, %7 : vector<128x64xf32>
    %9 = arith.truncf %8 : vector<128x64xf32> to vector<128x64xbf16>
    %c0_7 = arith.constant 0 : index
    %c0_8 = arith.constant 0 : index
    %10 = vector.load %arg5[%c0_7, %c0_8] : memref<64x128xbf16, #tpu.memory_space<vmem>>, vector<64x128xbf16>
    %cst_9 = arith.constant dense<0.000000e+00> : vector<128x128xf32>
    %11 = tpu.matmul %9, %10, %cst_9 {dimension_numbers = #tpu.dot_dimension_numbers<[1], [0], [0], [1], [0, 0, 1, 1], [], []>} : vector<128x64xbf16>, vector<64x128xbf16>, vector<128x128xf32> -> vector<128x128xf32>
    %c0_10 = arith.constant 0 : index
    %c0_11 = arith.constant 0 : index
    %12 = vector.load %arg6[%c0_10, %c0_11] : memref<1x128xf32, #tpu.memory_space<vmem>>, vector<1x128xf32>
    %13 = vector.broadcast %12 : vector<1x128xf32> to vector<128x128xf32>
    %14 = arith.addf %11, %13 : vector<128x128xf32>
    %cst_12 = arith.constant 0.000000e+00 : f32
    %15 = vector.broadcast %cst_12 : f32 to vector<128x128xf32>
    %16 = arith.maximumf %14, %15 : vector<128x128xf32>
    %17 = arith.truncf %16 : vector<128x128xf32> to vector<128x128xbf16>
    %c0_13 = arith.constant 0 : index
    %c0_14 = arith.constant 0 : index
    %18 = vector.load %arg7[%c0_13, %c0_14] : memref<128x1024xbf16, #tpu.memory_space<vmem>>, vector<128x1024xbf16>
    %cst_15 = arith.constant dense<0.000000e+00> : vector<128x1024xf32>
    %19 = tpu.matmul %17, %18, %cst_15 {dimension_numbers = #tpu.dot_dimension_numbers<[1], [0], [0], [1], [0, 0, 1, 1], [], []>} : vector<128x128xbf16>, vector<128x1024xbf16>, vector<128x1024xf32> -> vector<128x1024xf32>
    %20 = arith.truncf %19 : vector<128x1024xf32> to vector<128x1024xbf16>
    %c0_i32 = arith.constant 0 : i32
    %21 = arith.cmpi eq, %arg1, %c0_i32 : i32
    %22 = arith.extui %21 : i1 to i32
    %c0_i32_16 = arith.constant 0 : i32
    %23 = arith.cmpi ne, %22, %c0_i32_16 : i32
    scf.if %23 {
      %cst_24 = arith.constant 0xFF80 : bf16
      %32 = vector.broadcast %cst_24 : bf16 to vector<1x1024xbf16>
      %c0_25 = arith.constant 0 : index
      %c0_26 = arith.constant 0 : index
      %33 = vector.load %arg16[%c0_25, %c0_26] : memref<1x1024xbf16, #tpu.memory_space<vmem>>, vector<1x1024xbf16>
      tpu.vector_store %arg16[%c0_25, %c0_26], %32 {strides = array<i32>} : memref<1x1024xbf16, #tpu.memory_space<vmem>>, vector<1x1024xbf16>,
    } else {
    }
    %c0_17 = arith.constant 0 : index
    %c0_18 = arith.constant 0 : index
    %24 = vector.load %arg16[%c0_17, %c0_18] : memref<1x1024xbf16, #tpu.memory_space<vmem>>, vector<1x1024xbf16>
    %cst_19 = arith.constant dense<0xFF80> : vector<1024xbf16>
    %25 = vector.multi_reduction <maximumf>, %20, %cst_19 [0] : vector<128x1024xbf16> to vector<1024xbf16>
    %26 = vector.shape_cast %25 : vector<1024xbf16> to vector<1x1024xbf16>
    %27 = arith.maximumf %24, %26 : vector<1x1024xbf16>
    %c0_20 = arith.constant 0 : index
    %c0_21 = arith.constant 0 : index
    %28 = vector.load %arg16[%c0_20, %c0_21] : memref<1x1024xbf16, #tpu.memory_space<vmem>>, vector<1x1024xbf16>
    tpu.vector_store %arg16[%c0_20, %c0_21], %27 {strides = array<i32>} : memref<1x1024xbf16, #tpu.memory_space<vmem>>, vector<1x1024xbf16>,
    %c0_i32_22 = arith.constant 0 : i32
    %29 = arith.cmpi eq, %arg1, %c0_i32_22 : i32
    %30 = arith.extui %29 : i1 to i32
    %c0_i32_23 = arith.constant 0 : i32
    %31 = arith.cmpi ne, %30, %c0_i32_23 : i32
    scf.if %31 {
      %c0_24 = arith.constant 0 : index
      %c0_25 = arith.constant 0 : index
      %32 = vector.load %arg16[%c0_24, %c0_25] : memref<1x1024xbf16, #tpu.memory_space<vmem>>, vector<1x1024xbf16>
      %33 = arith.extf %32 : vector<1x1024xbf16> to vector<1x1024xf32>
      %c0_26 = arith.constant 0 : index
      %c0_27 = arith.constant 0 : index
      %34 = vector.load %arg8[%c0_26, %c0_27] : memref<1x1024xf32, #tpu.memory_space<vmem>>, vector<1x1024xf32>
      %35 = arith.addf %33, %34 : vector<1x1024xf32>
      %cst_28 = arith.constant 0.000000e+00 : f32
      %36 = vector.broadcast %cst_28 : f32 to vector<1x1024xf32>
      %37 = arith.maximumf %35, %36 : vector<1x1024xf32>
      %38 = arith.truncf %37 : vector<1x1024xf32> to vector<1x1024xbf16>
      %c0_29 = arith.constant 0 : index
      %c0_30 = arith.constant 0 : index
      %39 = vector.load %arg9[%c0_29, %c0_30] : memref<1024x512xbf16, #tpu.memory_space<vmem>>, vector<1024x512xbf16>
      %cst_31 = arith.constant dense<0.000000e+00> : vector<1x512xf32>
      %40 = tpu.matmul %38, %39, %cst_31 {dimension_numbers = #tpu.dot_dimension_numbers<[1], [0], [0], [1], [0, 0, 1, 1], [], []>} : vector<1x1024xbf16>, vector<1024x512xbf16>, vector<1x512xf32> -> vector<1x512xf32>
      %c0_32 = arith.constant 0 : index
      %c0_33 = arith.constant 0 : index
      %41 = vector.load %arg10[%c0_32, %c0_33] : memref<1x512xf32, #tpu.memory_space<vmem>>, vector<1x512xf32>
      %42 = arith.addf %40, %41 : vector<1x512xf32>
      %cst_34 = arith.constant 0.000000e+00 : f32
      %43 = vector.broadcast %cst_34 : f32 to vector<1x512xf32>
      %44 = arith.maximumf %42, %43 : vector<1x512xf32>
      %45 = arith.truncf %44 : vector<1x512xf32> to vector<1x512xbf16>
      %c0_35 = arith.constant 0 : index
      %c0_36 = arith.constant 0 : index
      %46 = vector.load %arg11[%c0_35, %c0_36] : memref<512x256xbf16, #tpu.memory_space<vmem>>, vector<512x256xbf16>
      %cst_37 = arith.constant dense<0.000000e+00> : vector<1x256xf32>
      %47 = tpu.matmul %45, %46, %cst_37 {dimension_numbers = #tpu.dot_dimension_numbers<[1], [0], [0], [1], [0, 0, 1, 1], [], []>} : vector<1x512xbf16>, vector<512x256xbf16>, vector<1x256xf32> -> vector<1x256xf32>
      %c0_38 = arith.constant 0 : index
      %c0_39 = arith.constant 0 : index
      %48 = vector.load %arg12[%c0_38, %c0_39] : memref<1x256xf32, #tpu.memory_space<vmem>>, vector<1x256xf32>
      %49 = arith.addf %47, %48 : vector<1x256xf32>
      %cst_40 = arith.constant 0.000000e+00 : f32
      %50 = vector.broadcast %cst_40 : f32 to vector<1x256xf32>
      %51 = arith.maximumf %49, %50 : vector<1x256xf32>
      %52 = arith.truncf %51 : vector<1x256xf32> to vector<1x256xbf16>
      %c0_41 = arith.constant 0 : index
      %c0_42 = arith.constant 0 : index
      %53 = vector.load %arg13[%c0_41, %c0_42] : memref<256x3xbf16, #tpu.memory_space<vmem>>, vector<256x3xbf16>
      %cst_43 = arith.constant dense<0.000000e+00> : vector<1x3xf32>
      %54 = tpu.matmul %52, %53, %cst_43 {dimension_numbers = #tpu.dot_dimension_numbers<[1], [0], [0], [1], [0, 0, 1, 1], [], []>} : vector<1x256xbf16>, vector<256x3xbf16>, vector<1x3xf32> -> vector<1x3xf32>
      %c0_44 = arith.constant 0 : index
      %c0_45 = arith.constant 0 : index
      %55 = vector.load %arg14[%c0_44, %c0_45] : memref<1x3xf32, #tpu.memory_space<vmem>>, vector<1x3xf32>
      %56 = arith.addf %54, %55 : vector<1x3xf32>
      %c0_46 = arith.constant 0 : index
      %c0_47 = arith.constant 0 : index
      %c0_48 = arith.constant 0 : index
      %57 = vector.load %arg15[%c0_46, %c0_47, %c0_48] : memref<1x1x3xf32, #tpu.memory_space<vmem>>, vector<1x1x3xf32>
      %58 = vector.shape_cast %57 : vector<1x1x3xf32> to vector<1x3xf32>
      %59 = vector.shape_cast %56 : vector<1x3xf32> to vector<1x1x3xf32>
      tpu.vector_store %arg15[%c0_46, %c0_47, %c0_48], %59 {strides = array<i32>} : memref<1x1x3xf32, #tpu.memory_space<vmem>>, vector<1x1x3xf32>,
    } else {
    }
    return
  }
  func.func @transform_0(%arg0: i32, %arg1: i32) -> (i32, i32, i32) {
    %c0_i32 = arith.constant 0 : i32
    %c0_i32_0 = arith.constant 0 : i32
    return %arg0, %c0_i32, %arg1 : i32, i32, i32
  }
  func.func @transform_1(%arg0: i32, %arg1: i32) -> (i32, i32) {
    %c0_i32 = arith.constant 0 : i32
    %c0_i32_0 = arith.constant 0 : i32
    %c0_i32_1 = arith.constant 0 : i32
    return %c0_i32, %c0_i32_0 : i32, i32
  }
  func.func @transform_2(%arg0: i32, %arg1: i32) -> (i32, i32) {
    %c0_i32 = arith.constant 0 : i32
    %c0_i32_0 = arith.constant 0 : i32
    %c0_i32_1 = arith.constant 0 : i32
    return %c0_i32, %c0_i32_0 : i32, i32
  }
  func.func @transform_3(%arg0: i32, %arg1: i32) -> (i32, i32) {
    %c0_i32 = arith.constant 0 : i32
    %c0_i32_0 = arith.constant 0 : i32
    %c0_i32_1 = arith.constant 0 : i32
    return %c0_i32, %c0_i32_0 : i32, i32
  }
  func.func @transform_4(%arg0: i32, %arg1: i32) -> (i32, i32) {
    %c0_i32 = arith.constant 0 : i32
    %c0_i32_0 = arith.constant 0 : i32
    %c0_i32_1 = arith.constant 0 : i32
    return %c0_i32, %c0_i32_0 : i32, i32
  }
  func.func @transform_5(%arg0: i32, %arg1: i32) -> (i32, i32) {
    %c0_i32 = arith.constant 0 : i32
    %c0_i32_0 = arith.constant 0 : i32
    %c0_i32_1 = arith.constant 0 : i32
    return %c0_i32, %c0_i32_0 : i32, i32
  }
  func.func @transform_6(%arg0: i32, %arg1: i32) -> (i32, i32) {
    %c0_i32 = arith.constant 0 : i32
    %c0_i32_0 = arith.constant 0 : i32
    %c0_i32_1 = arith.constant 0 : i32
    return %c0_i32, %c0_i32_0 : i32, i32
  }
  func.func @transform_7(%arg0: i32, %arg1: i32) -> (i32, i32) {
    %c0_i32 = arith.constant 0 : i32
    %c0_i32_0 = arith.constant 0 : i32
    %c0_i32_1 = arith.constant 0 : i32
    return %c0_i32, %c0_i32_0 : i32, i32
  }
  func.func @transform_8(%arg0: i32, %arg1: i32) -> (i32, i32) {
    %c0_i32 = arith.constant 0 : i32
    %c0_i32_0 = arith.constant 0 : i32
    %c0_i32_1 = arith.constant 0 : i32
    return %c0_i32, %c0_i32_0 : i32, i32
  }
  func.func @transform_9(%arg0: i32, %arg1: i32) -> (i32, i32) {
    %c0_i32 = arith.constant 0 : i32
    %c0_i32_0 = arith.constant 0 : i32
    %c0_i32_1 = arith.constant 0 : i32
    return %c0_i32, %c0_i32_0 : i32, i32
  }
  func.func @transform_10(%arg0: i32, %arg1: i32) -> (i32, i32) {
    %c0_i32 = arith.constant 0 : i32
    %c0_i32_0 = arith.constant 0 : i32
    %c0_i32_1 = arith.constant 0 : i32
    return %c0_i32, %c0_i32_0 : i32, i32
  }
  func.func @transform_11(%arg0: i32, %arg1: i32) -> (i32, i32) {
    %c0_i32 = arith.constant 0 : i32
    %c0_i32_0 = arith.constant 0 : i32
    %c0_i32_1 = arith.constant 0 : i32
    return %c0_i32, %c0_i32_0 : i32, i32
  }
  func.func @transform_12(%arg0: i32, %arg1: i32) -> (i32, i32) {
    %c0_i32 = arith.constant 0 : i32
    %c0_i32_0 = arith.constant 0 : i32
    %c0_i32_1 = arith.constant 0 : i32
    return %c0_i32, %c0_i32_0 : i32, i32
  }
  func.func @transform_13(%arg0: i32, %arg1: i32) -> (i32, i32, i32) {
    %c0_i32 = arith.constant 0 : i32
    %c0_i32_0 = arith.constant 0 : i32
    %c0_i32_1 = arith.constant 0 : i32
    return %arg0, %c0_i32, %c0_i32_0 : i32, i32, i32
  }
}

</mosaic_0001>

<bundles_post_ra>
// kernel: tnet_forward_pallas.1
= control target key start
LH: loop header
LB: loop body
LE: loop exit
PB: predicated region body
PF: predicated region fallthrough
CT: control target
= control target key end

     0   :  { %s5861_s25 = smov 0   ;;  %s5863_s26 = smov 0   ;;  %s7426_s0 = inlined_call_operand.vmem [shape: bf16[2,8,128], index: 0, kind: input, shape index: {}]   ;;  %s7427_s1 = inlined_call_operand.vmem [shape: bf16[8,64], index: 1, kind: input, shape index: {}]   ;;  %s7428_s2 = inlined_call_operand.vmem [shape: f32[1,64], index: 2, kind: input, shape index: {}]   ;;  %s7429_s3 = inlined_call_operand.vmem [shape: bf16[64,128], index: 3, kind: input, shape index: {}]   ;;  %s7430_s4 = inlined_call_operand.vmem [shape: f32[1,128], index: 4, kind: input, shape index: {}]   ;;  %s7431_s5 = inlined_call_operand.vmem [shape: bf16[128,1024], index: 5, kind: input, shape index: {}]   ;;  %s7432_s6 = inlined_call_operand.vmem [shape: f32[1,1024], index: 6, kind: input, shape index: {}]   ;;  %s7433_s7 = inlined_call_operand.vmem [shape: bf16[1024,512], index: 7, kind: input, shape index: {}]   ;;  %s7434_s8 = inlined_call_operand.vmem [shape: f32[1,512], index: 8, kind: input, shape index: {}]   ;;  %s7435_s9 = inlined_call_operand.vmem [shape: bf16[512,256], index: 9, kind: input, shape index: {}]   ;;  %s7436_s10 = inlined_call_operand.vmem [shape: f32[1,256], index: 10, kind: input, shape index: {}]   ;;  %s7437_s11 = inlined_call_operand.vmem [shape: bf16[256,3], index: 11, kind: input, shape index: {}]   ;;  %s7438_s12 = inlined_call_operand.vmem [shape: f32[1,3], index: 12, kind: input, shape index: {}]   ;;  %s7439_s13 = inlined_call_operand.vmem [shape: f32[2,1,3], index: 13, kind: output, shape index: {}]  }
   0x1   :  { %s5865_s27 = smov 0  }
   0x2 LB: > { %s35_s28 = sadd.s32 1, %s5781_s26  ;;  %p4673_p0 = scmp.ge.s32.totalorder %s5785_s27, 1  ;;  %s5785_s27 = sphi %s5865_s27, %s23_s27   ;;  %s5781_s26 = sphi %s5863_s26, %s7455_s26   ;;  %s5777_s25 = sphi %s5861_s25, %s7454_s25  }
   0x3   : > { %p37_p1 = scmp.ge.s32.totalorder %s35_s28, 2  ;;  %p403_p2 = scmp.lt.s32.totalorder %s5785_s27, 3 }
   0x5   : > { %s7457_s28 = smov (%p37_p1, %s35_s28), 0  ;;  %p404_p3 = pnand %p4673_p0, %p403_p2 }
   0x6   : > { %p447_p4 = scmp.lt.s32.totalorder (!%p404_p3), %s5777_s25, 1  ;;  %v460_v0 = vld [vmem:[%s7427_s1] sm:$0xf] (!%p404_p3)  ;;  %vm509_vm0 = vcmask (!%p404_p3), 1043456   ;;  %v5264_v4 = vld [vmem:[%s7429_s3 + $0x8] sm:$0xff] (!%p404_p3)   ;;  %vm484_vm1 = vcmask (!%p404_p3), 64512  }
   0x7   : > { %407 = sbr.rel (%p404_p3) target bundleno = 1911 (0x777), region = 72  ;;  %5234 = vmatprep.subr.msk.bf16.mxu0 (!%p404_p3), %vm509_vm0, %v460_v0  ;;  %v511_v1 = vsel (!%p404_p3), %vm509_vm0, %v460_v0, 0  ;;  %v5263_v3 = vld [vmem:[%s7429_s3] sm:$0xff] (!%p404_p3)   ;;  %v5265_v13 = vld [vmem:[%s7429_s3 + $0x10] sm:$0xff] (!%p404_p3)   ;;  %v5266_v14 = vld [vmem:[%s7429_s3 + $0x18] sm:$0xff] (!%p404_p3)   ;;  %vm673_vm2 = vcmask (!%p404_p3), 523264  }
   0x8   : > { %5143 = vmatpush3.bf16.msra.mxu0 (!%p404_p3), %v511_v1  ;;  %5160 = vmatprep.subr.bf16.mxu1 (!%p404_p3), %v5263_v3  ;;  %v819_v15 = vld [vmem:[%s7431_s5] sm:$0xff] (!%p404_p3)  ;;  %vm1723_vm3 = vcmask (!%p404_p3), 1040384   ;;  %vm1724_vm4 = vsmask.f32 (!%p404_p3), 256  ;;  %vm1726_vm5 = vcmask (!%p404_p3), 1041409   ;;  %vm1730_vm9 = vcmask (!%p404_p3), 1042434  }
   0x9   : > { %5161 = vmatpush3.bf16.msra.mxu1 (!%p404_p3), %v5263_v3  ;;  %v823_v16 = vld [vmem:[%s7431_s5 + $0x20] sm:$0xff] (!%p404_p3)  ;;  %vm1727_vm6 = vsmask.f32 (!%p404_p3), 1280  ;;  %vm6487_vm7 = vmand (!%p404_p3), %vm1723_vm3, %vm1724_vm4  ;;  %vm1731_vm10 = vsmask.f32 (!%p404_p3), 2304  ;;  %vm1734_vm13 = vcmask (!%p404_p3), 1043459  }
   0xa   : > { %5162 = vmatprep.subr.bf16.mxu1 (!%p404_p3), %v5264_v4  ;;  %v827_v17 = vld [vmem:[%s7431_s5 + $0x40] sm:$0xff] (!%p404_p3)  ;;  %v4697_v18 = vcombine.low (!%p404_p3), %v819_v15, %v823_v16  ;;  %v4698_v19 = vcombine.high (!%p404_p3), %v819_v15, %v823_v16  ;;  %vm6491_vm8 = vmand (!%p404_p3), %vm1726_vm5, %vm1727_vm6  ;;  %vm1735_vm14 = vsmask.f32 (!%p404_p3), 3328  ;;  %vm1742_vm5 = vcmask (!%p404_p3), 1045509  }
   0xb   : > { %v831_v20 = vld [vmem:[%s7431_s5 + $0x60] sm:$0xff] (!%p404_p3)  ;;  %vm1729_vm11 = vmor (!%p404_p3), %vm6491_vm8, %vm6487_vm7  ;;  %vm1743_vm6 = vsmask.f32 (!%p404_p3), 5376 }
   0xc   : > { %v4706_v21 = vcombine.high (!%p404_p3), %v827_v17, %v831_v20  ;;  %v835_v22 = vld [vmem:[%s7431_s5 + $0x80] sm:$0xff] (!%p404_p3)  ;;  %1203 = vmatprep.subr.bf16.mxu0 (!%p404_p3), %v4698_v19  ;;  %v4705_v24 = vcombine.low (!%p404_p3), %v827_v17, %v831_v20  ;;  %vm1732_vm12 = vmand (!%p404_p3), %vm1730_vm9, %vm1731_vm10  ;;  %vm1746_vm9 = vcmask (!%p404_p3), 1046534   ;;  %vm1747_vm10 = vsmask.f32 (!%p404_p3), 6400 }
   0xd   : > { %5163 = vmatpush3.bf16.msra.mxu1 (!%p404_p3), %v5264_v4  ;;  %v839_v23 = vld [vmem:[%s7431_s5 + $0xa0] sm:$0xff] (!%p404_p3)  ;;  %vm6499_vm15 = vmor (!%p404_p3), %vm1732_vm12, %vm1729_vm11 }
   0xe   : > { %s7459_s25 = smov (!%p447_p4, %s5777_s25), 1  ;;  %5164 = vmatprep.subr.bf16.mxu1 %v5265_v13  ;;  %v4714_v25 = vcombine.high %v835_v22, %v839_v23  ;;  %v843_v26 = vld [vmem:[%s7431_s5 + $0xc0] sm:$0xff]  ;;  %v5932_v28 = vcombine.low %v835_v22, %v839_v23  ;;  %vm1736_vm0 = vmand %vm1734_vm13, %vm1735_vm14  ;;  %vm1750_vm13 = vcmask 1047559   ;;  %vm1751_vm14 = vsmask.f32 7424 }
   0xf   : > { %s4674_s14 = sshll.u32 %s7459_s25, 2  ;;  %v847_v27 = vld [vmem:[%s7431_s5 + $0xe0] sm:$0xff]  ;;  %vm1737_vm3 = vmor %vm1736_vm0, %vm6499_vm15  ;;  %s456_s21 = scalar_lea.vmem %s7439_s13, %s7459_s25 }
  0x10   : > { %s453_s17 = scalar_lea.vmem %s7426_s0, %s4674_s14  ;;  %v5934_v29 = vcombine.high %v843_v26, %v847_v27  ;;  %v851_v30 = vld [vmem:[%s7431_s5 + $0x100] sm:$0xff]  ;;  %v5943_v32 = vcombine.low %v843_v26, %v847_v27  ;;  %vm6509_vm8 = vmand %vm1742_vm5, %vm1743_vm6 }
  0x11   : > { %v459_v2 = vld [vmem:[%s453_s17] sm:$0xf]  ;;  %5165 = vmatpush3.bf16.msra.mxu1 %v5265_v13  ;;  %vm1748_vm12 = vmand %vm1746_vm9, %vm1747_vm10 }
  0x12   : > { %468 = vxpose.xlu0.c.b16.start.end [1/1] (short) %v459_v2, 128  ;;  %5166 = vmatprep.subr.bf16.mxu1 %v5266_v14  ;;  %v855_v31 = vld [vmem:[%s7431_s5 + $0x120] sm:$0xff]  ;;  %vm6521_vm0 = vmand %vm1750_vm13, %vm1751_vm14 }
  0x13   : > { %v5946_v33 = vcombine.high %v851_v30, %v855_v31  ;;  %v859_v34 = vld [vmem:[%s7431_s5 + $0x140] sm:$0xff]  ;;  %v5955_v36 = vcombine.low %v851_v30, %v855_v31 }
  0x14   : > { %v863_v35 = vld [vmem:[%s7431_s5 + $0x160] sm:$0xff] }
  0x15   : > { %5167 = vmatpush3.bf16.msra.mxu1 %v5266_v14  ;;  %v5958_v37 = vcombine.high %v859_v34, %v863_v35  ;;  %v5961_v38 = vcombine.low %v859_v34, %v863_v35  ;;  %v5968_v39 = vld [vmem:[%s7428_s2] ss:$0 sm:$0xff] }
  0x16   : > { %5184 = vmatprep.subr.bf16.mxu1 %v4698_v19 }
  0x78   : > { %v476_v5 = vpop.trf.xlu0 }
  0x79   : > { %5144 = vmatprep.mubr.msk.bf16.mxu0 %vm484_vm1, %v476_v5 }
  0x7c   : > { %v477_v6 = vpop.trf.xlu0 }
  0x7d   : > { %5145 = vmatmul.mubr.msk.bf16.vlgmr.msra.gmra.mrb[0].mxu0 %vm484_vm1, %v477_v6 }
  0x7e   : > { %1204 = vmatpush1.bf16.msra.mxu0 %v4697_v18 }
  0x7f   : > { %1205 = vmatprep.subr.bf16.mxu0 %v4706_v21 }
  0x80   : > { %v478_v7 = vpop.trf.xlu0 }
  0x81   : > { %5148 = vmatprep.mubr.msk.bf16.mxu0 %vm484_vm1, %v478_v7 }
  0x82   : > { %1206 = vmatpush1.bf16.msra.mxu0 %v4705_v24 }
  0x83   : > { %1207 = vmatprep.subr.bf16.mxu0 %v4714_v25 }
  0x84   : > { %v479_v8 = vpop.trf.xlu0 }
  0x85   : > { %5149 = vmatmul.mubr.msk.bf16.gmra.mrb[4].mxu0 %vm484_vm1, %v479_v8 }
  0x86   : > { %1208 = vmatpush1.bf16.msra.mxu0 %v5932_v28 }
  0x87   : > { %1209 = vmatprep.subr.bf16.mxu0 %v5934_v29 }
  0x88   : > { %v480_v9 = vpop.trf.xlu0 }
  0x89   : > { %5152 = vmatprep.mubr.msk.bf16.mxu0 %vm484_vm1, %v480_v9 }
  0x8a   : > { %1210 = vmatpush1.bf16.msra.mxu0 %v5943_v32 }
  0x8b   : > { %1211 = vmatprep.subr.bf16.mxu0 %v5946_v33 }
  0x8c   : > { %v481_v10 = vpop.trf.xlu0 }
  0x8d   : > { %5153 = vmatmul.mubr.msk.bf16.gmra.mrb[8].mxu0 %vm484_vm1, %v481_v10 }
  0x8e   : > { %1212 = vmatpush1.bf16.msra.mxu0 %v5955_v36 }
  0x8f   : > { %1213 = vmatprep.subr.bf16.mxu0 %v5958_v37 }
  0x90   : > { %v482_v11 = vpop.trf.xlu0 }
  0x91   : > { %5156 = vmatprep.mubr.msk.bf16.mxu0 %vm484_vm1, %v482_v11 }
  0x92   : > { %1214 = vmatpush1.bf16.msra.mxu0 %v5961_v38 }
  0x94   : > { %v483_v12 = vpop.trf.xlu0 }
  0x95   : > { %5157 = vmatmul.mubr.msk.bf16.gmra.mrb[12].mxu0 %vm484_vm1, %v483_v12  ;;  %vm1738_vm1 = vcmask 1044484  }
 0x150   : > { %v5146_v40 = vpop.f32.mrb[0].mxu0 }
 0x151   : > { %v556_v41 = vadd.f32 %v5146_v40, %v5968_v39  ;;  %v547_v42 = vpop.f32.mrb[1].mxu0  ;;  %v821_v40 = vld [vmem:[%s7431_s5 + $0x10] sm:$0xff] }
 0x152   : > { %v548_v43 = vadd.f32 %v5968_v39, %v547_v42  ;;  %v5147_v44 = vpop.f32.mrb[2].mxu0 }
 0x153   : > { %v559_v45 = vadd.f32 %v5147_v44, %v5968_v39  ;;  %v550_v46 = vpop.f32.mrb[3].mxu0  ;;  %v612_v48 = vmax.f32 %v556_v41, 0.0  ;;  %v825_v41 = vld [vmem:[%s7431_s5 + $0x30] sm:$0xff] }
 0x154   : > { %v551_v47 = vadd.f32 %v5968_v39, %v550_v46  ;;  %v610_v50 = vmax.f32 %v548_v43, 0.0  ;;  %v4702_v42 = vcombine.high %v821_v40, %v825_v41  ;;  %v5787_v43 = vmov 0   ;;  %v6029_v46 = vld [vmem:[%s7431_s5 + $0x28] sm:$0xff] }
 0x155   : > { %v613_v49 = vmax.f32 %v559_v45, 0.0  ;;  %1235 = vmatprep.mubr.bf16.mxu0 %v5787_v43  ;;  %v4701_v44 = vcombine.low %v821_v40, %v825_v41  ;;  %v6024_v45 = vld [vmem:[%s7431_s5 + $0x8] sm:$0xff]  ;;  %v861_v41 = vld [vmem:[%s7431_s5 + $0x150] sm:$0xff] }
 0x156   : > { %v611_v51 = vmax.f32 %v551_v47, 0.0  ;;  %v4700_v47 = vcombine.high %v6024_v45, %v6029_v46  ;;  %v832_v40 = vld [vmem:[%s7431_s5 + $0x68] sm:$0xff] }
 0x157   : > { %v627_v52 = vpack.c.bf16 %v613_v49, %v612_v48  ;;  %v4699_v48 = vcombine.low %v6024_v45, %v6029_v46  ;;  %v6038_v49 = vld [vmem:[%s7430_s4] ss:$0 sm:$0xff]  ;;  %v848_v45 = vld [vmem:[%s7431_s5 + $0xe8] sm:$0xff]  ;;  %v877_v46 = vld [vmem:[%s7431_s5 + $0x1d0] sm:$0xff] }
 0x158   : > { %v5150_v53 = vpop.f32.mrb[4].mxu0  ;;  %v626_v54 = vpack.c.bf16 %v611_v51, %v610_v50 }
 0x159   : > { %v572_v55 = vadd.f32 %v5150_v53, %v5968_v39  ;;  %v563_v56 = vpop.f32.mrb[5].mxu0 }
 0x15a   : > { %v564_v57 = vadd.f32 %v5968_v39, %v563_v56  ;;  %v5151_v58 = vpop.f32.mrb[6].mxu0  ;;  %5168 = vmatprep.mubr.msk.bf16.mxu1 %vm673_vm2, %v626_v54 }
 0x15b   : > { %v575_v59 = vadd.f32 %v5151_v58, %v5968_v39  ;;  %v566_v60 = vpop.f32.mrb[7].mxu0  ;;  %5169 = vmatmul.mubr.msk.bf16.vlgmr.msra.gmra.mrb[0].mxu1 %vm673_vm2, %v627_v52  ;;  %v616_v62 = vmax.f32 %v572_v55, 0.0 }
 0x15c   : > { %v567_v61 = vadd.f32 %v5968_v39, %v566_v60  ;;  %5192 = vmatpush1.bf16.msra.mxu1 %v4697_v18  ;;  %v614_v0 = vmax.f32 %v564_v57, 0.0  ;;  %v829_v60 = vld [vmem:[%s7431_s5 + $0x50] sm:$0xff] }
 0x15d   : > { %v617_v63 = vmax.f32 %v575_v59, 0.0  ;;  %5185 = vmatprep.subr.bf16.mxu1 %v4706_v21 }
 0x15e   : > { %v615_v1 = vmax.f32 %v567_v61, 0.0  ;;  %v833_v61 = vld [vmem:[%s7431_s5 + $0x70] sm:$0xff] }
 0x15f   : > { %v629_v2 = vpack.c.bf16 %v617_v63, %v616_v62 }
 0x160   : > { %v628_v3 = vpack.c.bf16 %v615_v1, %v614_v0  ;;  %v5154_v4 = vpop.f32.mrb[8].mxu0  ;;  %5193 = vmatpush1.bf16.msra.mxu1 %v4705_v24 }
 0x161   : > { %v588_v5 = vadd.f32 %v5154_v4, %v5968_v39  ;;  %v579_v6 = vpop.f32.mrb[9].mxu0  ;;  %5186 = vmatprep.subr.bf16.mxu1 %v4714_v25 }
 0x162   : > { %v580_v7 = vadd.f32 %v5968_v39, %v579_v6  ;;  %v5155_v8 = vpop.f32.mrb[10].mxu0  ;;  %5172 = vmatprep.mubr.msk.bf16.mxu1 %vm673_vm2, %v628_v3  ;;  %v4710_v3 = vcombine.high %v829_v60, %v833_v61  ;;  %v837_v6 = vld [vmem:[%s7431_s5 + $0x90] sm:$0xff] }
 0x163   : > { %v591_v9 = vadd.f32 %v5155_v8, %v5968_v39  ;;  %v582_v10 = vpop.f32.mrb[11].mxu0  ;;  %5173 = vmatmul.mubr.msk.bf16.gmra.mrb[4].mxu1 %vm673_vm2, %v629_v2  ;;  %v620_v12 = vmax.f32 %v588_v5, 0.0 }
 0x164   : > { %v583_v11 = vadd.f32 %v5968_v39, %v582_v10  ;;  %5194 = vmatpush1.bf16.msra.mxu1 %v5932_v28  ;;  %v618_v14 = vmax.f32 %v580_v7, 0.0  ;;  %v841_v7 = vld [vmem:[%s7431_s5 + $0xb0] sm:$0xff] }
 0x165   : > { %v621_v13 = vmax.f32 %v591_v9, 0.0  ;;  %5187 = vmatprep.subr.bf16.mxu1 %v5934_v29 }
 0x166   : > { %v619_v15 = vmax.f32 %v583_v11, 0.0 }
 0x167   : > { %v631_v16 = vpack.c.bf16 %v621_v13, %v620_v12  ;;  %v4709_v12 = vcombine.low %v829_v60, %v833_v61  ;;  %v869_v60 = vld [vmem:[%s7431_s5 + $0x190] sm:$0xff] }
 0x168   : > { %v630_v17 = vpack.c.bf16 %v619_v15, %v618_v14  ;;  %v5158_v18 = vpop.f32.mrb[12].mxu0  ;;  %5195 = vmatpush1.bf16.msra.mxu1 %v5943_v32  ;;  %v867_v32 = vld [vmem:[%s7431_s5 + $0x180] sm:$0xff]  ;;  %v4718_v14 = vcombine.high %v837_v6, %v841_v7  ;;  %v873_v61 = vld [vmem:[%s7431_s5 + $0x1b0] sm:$0xff] }
 0x169   : > { %v604_v19 = vadd.f32 %v5158_v18, %v5968_v39  ;;  %v595_v20 = vpop.f32.mrb[13].mxu0  ;;  %5188 = vmatprep.subr.bf16.mxu1 %v5946_v33  ;;  %v871_v33 = vld [vmem:[%s7431_s5 + $0x1a0] sm:$0xff]  ;;  %v849_v18 = vld [vmem:[%s7431_s5 + $0xf0] sm:$0xff] }
 0x16a   : > { %v596_v21 = vadd.f32 %v5968_v39, %v595_v20  ;;  %5176 = vmatprep.mubr.msk.bf16.mxu1 %vm673_vm2, %v630_v17  ;;  %v5159_v22 = vpop.f32.mrb[14].mxu0  ;;  %v4746_v34 = vcombine.high %v867_v32, %v871_v33  ;;  %v4745_v35 = vcombine.low %v867_v32, %v871_v33  ;;  %v845_v17 = vld [vmem:[%s7431_s5 + $0xd0] sm:$0xff] }
 0x16b   : > { %v624_v23 = vmax.f32 %v604_v19, 0.0  ;;  %v607_v24 = vadd.f32 %v5159_v22, %v5968_v39  ;;  %5177 = vmatmul.mubr.msk.bf16.gmra.mrb[8].mxu1 %vm673_vm2, %v631_v16  ;;  %v598_v25 = vpop.f32.mrb[15].mxu0  ;;  %v4717_v22 = vcombine.low %v837_v6, %v841_v7 }
 0x16c   : > { %v622_v26 = vmax.f32 %v596_v21, 0.0  ;;  %v599_v27 = vadd.f32 %v5968_v39, %v598_v25  ;;  %5196 = vmatpush1.bf16.msra.mxu1 %v5955_v36  ;;  %1215 = vmatprep.subr.bf16.mxu0 %v4746_v34  ;;  %v875_v36 = vld [vmem:[%s7431_s5 + $0x1c0] sm:$0xff]  ;;  %v4726_v25 = vcombine.high %v845_v17, %v849_v18 }
 0x16d   : > { %v625_v28 = vmax.f32 %v607_v24, 0.0  ;;  %5189 = vmatprep.subr.bf16.mxu1 %v5958_v37  ;;  %1216 = vmatpush1.bf16.msra.mxu0 %v4745_v35  ;;  %v879_v37 = vld [vmem:[%s7431_s5 + $0x1e0] sm:$0xff] }
 0x16e   : > { %v623_v29 = vmax.f32 %v599_v27, 0.0  ;;  %v4753_v39 = vcombine.low %v875_v36, %v879_v37 }
 0x16f   : > { %v633_v30 = vpack.c.bf16 %v625_v28, %v624_v23  ;;  %v853_v28 = vld [vmem:[%s7431_s5 + $0x110] sm:$0xff] }
 0x170   : > { %v632_v31 = vpack.c.bf16 %v623_v29, %v622_v26  ;;  %5197 = vmatpush1.bf16.msra.mxu1 %v5961_v38  ;;  %v4754_v38 = vcombine.high %v875_v36, %v879_v37  ;;  %v857_v29 = vld [vmem:[%s7431_s5 + $0x130] sm:$0xff]  ;;  %v828_v37 = vld [vmem:[%s7431_s5 + $0x48] sm:$0xff] }
 0x171   : > { %5190 = vmatprep.subr.bf16.mxu1 %v4746_v34  ;;  %v4725_v34 = vcombine.low %v845_v17, %v849_v18  ;;  %v4734_v36 = vcombine.high %v853_v28, %v857_v29 }
 0x172   : > { %5180 = vmatprep.mubr.msk.bf16.mxu1 %vm673_vm2, %v632_v31  ;;  %1217 = vmatprep.subr.bf16.mxu0 %v4754_v38 }
 0x173   : > { %5181 = vmatmul.mubr.msk.bf16.gmra.mrb[12].mxu1 %vm673_vm2, %v633_v30  ;;  %1218 = vmatpush1.bf16.msra.mxu0 %v4753_v39  ;;  %vm1739_vm2 = vsmask.f32 4352 }
 0x174   : > { %5198 = vmatpush1.bf16.msra.mxu1 %v4745_v35  ;;  %1275 = vmatprep.mubr.bf16.mxu1 %v5787_v43  ;;  %vm1740_vm4 = vmand %vm1738_vm1, %vm1739_vm2  ;;  %vm4609_vm2 = vcmask 16384  }
 0x175   : > { %5191 = vmatprep.subr.bf16.mxu1 %v4754_v38  ;;  %1429 = vmatprep.subr.bf16.mxu0 %v4702_v42  ;;  %v865_v42 = vld [vmem:[%s7431_s5 + $0x170] sm:$0xff]  ;;  %vm6505_vm7 = vmor %vm1740_vm4, %vm1737_vm3 }
 0x176   : > { %v4741_v6 = vcombine.low %v861_v41, %v865_v42  ;;  %vm1745_vm11 = vmor %vm6509_vm8, %vm6505_vm7 }
 0x177   : > { %vm6517_vm15 = vmor %vm1748_vm12, %vm1745_vm11 }
 0x178   : > { %5199 = vmatpush1.bf16.msra.mxu1 %v4753_v39  ;;  %vm1753_vm1 = vmor %vm6521_vm0, %vm6517_vm15 }
 0x179   : > { %1316 = vmatprep.subr.bf16.mxu1 %v4700_v47 }
 0x22e   : > { %v5170_v50 = vpop.f32.mrb[0].mxu1 }
 0x22f   : > { %v741_v51 = vadd.f32 %v5170_v50, %v6038_v49  ;;  %v732_v52 = vpop.f32.mrb[1].mxu1 }
 0x230   : > { %v733_v53 = vadd.f32 %v6038_v49, %v732_v52  ;;  %v5171_v54 = vpop.f32.mrb[2].mxu1 }
 0x231   : > { %v744_v55 = vadd.f32 %v5171_v54, %v6038_v49  ;;  %v735_v56 = vpop.f32.mrb[3].mxu1  ;;  %v797_v58 = vmax.f32 %v741_v51, 0.0  ;;  %v4733_v51 = vcombine.low %v853_v28, %v857_v29  ;;  %v4708_v54 = vcombine.high %v828_v37, %v832_v40 }
 0x232   : > { %v736_v57 = vadd.f32 %v6038_v49, %v735_v56  ;;  %v795_v62 = vmax.f32 %v733_v53, 0.0  ;;  %v836_v56 = vld [vmem:[%s7431_s5 + $0x88] sm:$0xff] }
 0x233   : > { %v798_v59 = vmax.f32 %v744_v55, 0.0  ;;  %v4742_v55 = vcombine.high %v861_v41, %v865_v42  ;;  %v830_v42 = vld [vmem:[%s7431_s5 + $0x58] sm:$0xff] }
 0x234   : > { %v796_v63 = vmax.f32 %v736_v57, 0.0 }
 0x235   : > { %v6050_v0 = vpack.c.bf16 %v798_v59, %v797_v58  ;;  %v840_v59 = vld [vmem:[%s7431_s5 + $0xa8] sm:$0xff] }
 0x236   : > { %v6052_v1 = vpack.c.bf16 %v796_v63, %v795_v62  ;;  %v5174_v2 = vpop.f32.mrb[4].mxu1 }
 0x237   : > { %v757_v4 = vadd.f32 %v5174_v2, %v6038_v49  ;;  %v748_v5 = vpop.f32.mrb[5].mxu1 }
 0x238   : > { %v749_v8 = vadd.f32 %v6038_v49, %v748_v5  ;;  %v5175_v9 = vpop.f32.mrb[6].mxu1  ;;  %1236 = vmatmul.mubr.bf16.vlgmr.msra.gmra.mrb[16].mxu0 %v6052_v1  ;;  %v4707_v5 = vcombine.low %v828_v37, %v832_v40 }
 0x239   : > { %v760_v10 = vadd.f32 %v5175_v9, %v6038_v49  ;;  %v751_v11 = vpop.f32.mrb[7].mxu1  ;;  %1430 = vmatpush1.bf16.msra.mxu0 %v4701_v44  ;;  %1245 = vmatprep.mubr.bf16.mxu0 %v5787_v43  ;;  %v801_v15 = vmax.f32 %v757_v4, 0.0  ;;  %v4716_v9 = vcombine.high %v836_v56, %v840_v59 }
 0x23a   : > { %v752_v13 = vadd.f32 %v6038_v49, %v751_v11  ;;  %1431 = vmatprep.subr.bf16.mxu0 %v4710_v3  ;;  %v799_v19 = vmax.f32 %v749_v8, 0.0  ;;  %v844_v11 = vld [vmem:[%s7431_s5 + $0xc8] sm:$0xff] }
 0x23b   : > { %v802_v16 = vmax.f32 %v760_v10, 0.0  ;;  %v4750_v10 = vcombine.high %v869_v60, %v873_v61  ;;  %v4724_v17 = vcombine.high %v844_v11, %v848_v45 }
 0x23c   : > { %v800_v20 = vmax.f32 %v752_v13, 0.0 }
 0x23d   : > { %v6072_v21 = vpack.c.bf16 %v802_v16, %v801_v15  ;;  %1432 = vmatpush1.bf16.msra.mxu0 %v4709_v12  ;;  %v4749_v15 = vcombine.low %v869_v60, %v873_v61  ;;  %v854_v61 = vld [vmem:[%s7431_s5 + $0x118] sm:$0xff] }
 0x23e   : > { %v6074_v23 = vpack.c.bf16 %v800_v20, %v799_v19  ;;  %v5178_v24 = vpop.f32.mrb[8].mxu1  ;;  %1433 = vmatprep.subr.bf16.mxu0 %v4718_v14  ;;  %v4715_v14 = vcombine.low %v836_v56, %v840_v59  ;;  %v852_v19 = vld [vmem:[%s7431_s5 + $0x108] sm:$0xff] }
 0x23f   : > { %v773_v26 = vadd.f32 %v5178_v24, %v6038_v49  ;;  %v764_v27 = vpop.f32.mrb[9].mxu1  ;;  %v856_v20 = vld [vmem:[%s7431_s5 + $0x128] sm:$0xff] }
 0x240   : > { %v765_v30 = vadd.f32 %v6038_v49, %v764_v27  ;;  %v5179_v31 = vpop.f32.mrb[10].mxu1  ;;  %1246 = vmatmul.mubr.bf16.gmra.mrb[20].mxu0 %v6050_v0  ;;  %v864_v27 = vld [vmem:[%s7431_s5 + $0x168] sm:$0xff]  ;;  %v4731_v28 = vcombine.low %v852_v19, %v856_v20 }
 0x241   : > { %v776_v32 = vadd.f32 %v5179_v31, %v6038_v49  ;;  %v767_v33 = vpop.f32.mrb[11].mxu1  ;;  %1434 = vmatpush1.bf16.msra.mxu0 %v4717_v22  ;;  %1255 = vmatprep.mubr.bf16.mxu0 %v5787_v43  ;;  %v805_v38 = vmax.f32 %v773_v26, 0.0  ;;  %v4723_v22 = vcombine.low %v844_v11, %v848_v45  ;;  %v860_v26 = vld [vmem:[%s7431_s5 + $0x148] sm:$0xff]  ;;  %v878_v11 = vld [vmem:[%s7431_s5 + $0x1d8] sm:$0xff] }
 0x242   : > { %v768_v35 = vadd.f32 %v6038_v49, %v767_v33  ;;  %1435 = vmatprep.subr.bf16.mxu0 %v4726_v25  ;;  %v803_v44 = vmax.f32 %v765_v30, 0.0  ;;  %v4732_v25 = vcombine.high %v852_v19, %v856_v20  ;;  %v4740_v29 = vcombine.high %v860_v26, %v864_v27  ;;  %v868_v30 = vld [vmem:[%s7431_s5 + $0x188] sm:$0xff] }
 0x243   : > { %v806_v39 = vmax.f32 %v776_v32, 0.0  ;;  %v872_v31 = vld [vmem:[%s7431_s5 + $0x1a8] sm:$0xff]  ;;  %v4739_v32 = vcombine.low %v860_v26, %v864_v27 }
 0x244   : > { %v804_v47 = vmax.f32 %v768_v35, 0.0  ;;  %v4748_v33 = vcombine.high %v868_v30, %v872_v31  ;;  %v880_v35 = vld [vmem:[%s7431_s5 + $0x1e8] sm:$0xff] }
 0x245   : > { %v6100_v50 = vpack.c.bf16 %v806_v39, %v805_v38  ;;  %1436 = vmatpush1.bf16.msra.mxu0 %v4725_v34  ;;  %v876_v34 = vld [vmem:[%s7431_s5 + $0x1c8] sm:$0xff]  ;;  %v822_v38 = vld [vmem:[%s7431_s5 + $0x18] sm:$0xff] }
 0x246   : > { %v6102_v52 = vpack.c.bf16 %v804_v47, %v803_v44  ;;  %v5182_v53 = vpop.f32.mrb[12].mxu1  ;;  %1437 = vmatprep.subr.bf16.mxu0 %v4734_v36  ;;  %v4747_v36 = vcombine.low %v868_v30, %v872_v31  ;;  %v4756_v37 = vcombine.high %v876_v34, %v880_v35  ;;  %v826_v39 = vld [vmem:[%s7431_s5 + $0x38] sm:$0xff]  ;;  %v4755_v40 = vcombine.low %v876_v34, %v880_v35  ;;  %v5269_v35 = vld [vmem:[%s7433_s7 + $0x4] ss:$16 sps:$4 sm:$0xff]  }
 0x247   : > { %v789_v57 = vadd.f32 %v5182_v53, %v6038_v49  ;;  %v780_v58 = vpop.f32.mrb[13].mxu1  ;;  %v4704_v41 = vcombine.high %v822_v38, %v826_v39  ;;  %v834_v44 = vld [vmem:[%s7431_s5 + $0x78] sm:$0xff]  ;;  %v4703_v47 = vcombine.low %v822_v38, %v826_v39  ;;  %v5267_v39 = vld [vmem:[%s7433_s7] ss:$16 sps:$4 sm:$0xff]  }
 0x248   : > { %v781_v62 = vadd.f32 %v6038_v49, %v780_v58  ;;  %1256 = vmatmul.mubr.bf16.gmra.mrb[24].mxu0 %v6074_v23  ;;  %1276 = vmatmul.mubr.bf16.vlgmr.msra.gmra.mrb[16].mxu1 %v6102_v52  ;;  %v5183_v63 = vpop.f32.mrb[14].mxu1  ;;  %v838_v53 = vld [vmem:[%s7431_s5 + $0x98] sm:$0xff] }
 0x249   : > { %v809_v2 = vmax.f32 %v789_v57, 0.0  ;;  %1317 = vmatpush1.bf16.msra.mxu1 %v4699_v48  ;;  %v792_v3 = vadd.f32 %v5183_v63, %v6038_v49  ;;  %1438 = vmatpush1.bf16.msra.mxu0 %v4733_v51  ;;  %v783_v4 = vpop.f32.mrb[15].mxu1  ;;  %v881_v48 = vld [vmem:[%s7431_s5 + $0x1f0] sm:$0xff]  ;;  %v4712_v51 = vcombine.high %v830_v42, %v834_v44  ;;  %v846_v57 = vld [vmem:[%s7431_s5 + $0xd8] sm:$0xff] }
 0x24a   : > { %v807_v7 = vmax.f32 %v781_v62, 0.0  ;;  %v784_v8 = vadd.f32 %v6038_v49, %v783_v4  ;;  %1318 = vmatprep.subr.bf16.mxu1 %v4708_v54  ;;  %1439 = vmatprep.subr.bf16.mxu0 %v4742_v55  ;;  %v4758_v18 = vcombine.high %v877_v46, %v881_v48  ;;  %v4757_v24 = vcombine.low %v877_v46, %v881_v48  ;;  %v842_v54 = vld [vmem:[%s7431_s5 + $0xb8] sm:$0xff] }
 0x24b   : > { %v810_v12 = vmax.f32 %v792_v3, 0.0  ;;  %1265 = vmatprep.mubr.bf16.mxu0 %v5787_v43  ;;  %1285 = vmatprep.mubr.bf16.mxu1 %v5787_v43  ;;  %v4711_v55 = vcombine.low %v830_v42, %v834_v44  ;;  %v4720_v56 = vcombine.high %v838_v53, %v842_v54  ;;  %v850_v58 = vld [vmem:[%s7431_s5 + $0xf8] sm:$0xff]  ;;  %v4719_v59 = vcombine.low %v838_v53, %v842_v54 }
 0x24c   : > { %v808_v49 = vmax.f32 %v784_v8, 0.0  ;;  %v4728_v60 = vcombine.high %v846_v57, %v850_v58  ;;  %v858_v62 = vld [vmem:[%s7431_s5 + $0x138] sm:$0xff]  ;;  %v4727_v63 = vcombine.low %v846_v57, %v850_v58 }
 0x24d   : > { %v6139_v13 = vpack.c.bf16 %v810_v12, %v809_v2  ;;  %1319 = vmatpush1.bf16.msra.mxu1 %v4707_v5  ;;  %1440 = vmatpush1.bf16.msra.mxu0 %v4741_v6  ;;  %v4736_v2 = vcombine.high %v854_v61, %v858_v62  ;;  %v862_v3 = vld [vmem:[%s7431_s5 + $0x158] sm:$0xff]  ;;  %v4735_v5 = vcombine.low %v854_v61, %v858_v62 }
 0x24e   : > { %v6141_v16 = vpack.c.bf16 %v808_v49, %v807_v7  ;;  %1320 = vmatprep.subr.bf16.mxu1 %v4716_v9  ;;  %1441 = vmatprep.subr.bf16.mxu0 %v4750_v10  ;;  %v866_v4 = vld [vmem:[%s7431_s5 + $0x178] sm:$0xff] }
 0x24f   : > { %v4744_v6 = vcombine.high %v862_v3, %v866_v4  ;;  %v870_v7 = vld [vmem:[%s7431_s5 + $0x198] sm:$0xff]  ;;  %v4743_v9 = vcombine.low %v862_v3, %v866_v4  ;;  %v5281_v3 = vld [vmem:[%s7433_s7 + $0x44] ss:$16 sps:$4 sm:$0xff]  }
 0x250   : > { %1266 = vmatmul.mubr.bf16.gmra.mrb[28].mxu0 %v6072_v21  ;;  %1286 = vmatmul.mubr.bf16.gmra.mrb[20].mxu1 %v6100_v50  ;;  %v874_v8 = vld [vmem:[%s7431_s5 + $0x1b8] sm:$0xff] }
 0x251   : > { %1321 = vmatpush1.bf16.msra.mxu1 %v4715_v14  ;;  %1442 = vmatpush1.bf16.msra.mxu0 %v4749_v15  ;;  %v4752_v10 = vcombine.high %v870_v7, %v874_v8  ;;  %v882_v12 = vld [vmem:[%s7431_s5 + $0x1f8] sm:$0xff]  ;;  %v4751_v45 = vcombine.low %v870_v7, %v874_v8  ;;  %v5279_v8 = vld [vmem:[%s7433_s7 + $0x40] ss:$16 sps:$4 sm:$0xff]  }
 0x252   : > { %1322 = vmatprep.subr.bf16.mxu1 %v4724_v17  ;;  %1443 = vmatprep.subr.bf16.mxu0 %v4758_v18  ;;  %v4760_v46 = vcombine.high %v878_v11, %v882_v12  ;;  %v4759_v48 = vcombine.low %v878_v11, %v882_v12  ;;  %v5278_v57 = vld [vmem:[%s7433_s7 + $0x2c] ss:$16 sps:$4 sm:$0xff]   ;;  %v5276_v61 = vld [vmem:[%s7433_s7 + $0x28] ss:$16 sps:$4 sm:$0xff]  }
 0x253   : > { %1295 = vmatprep.mubr.bf16.mxu1 %v5787_v43  ;;  %1461 = vmatprep.mubr.bf16.mxu0 %v5787_v43  ;;  %v5284_v4 = vld [vmem:[%s7433_s7 + $0x4c] ss:$16 sps:$4 sm:$0xff]  }
 0x255   : > { %1323 = vmatpush1.bf16.msra.mxu1 %v4723_v22  ;;  %1444 = vmatpush1.bf16.msra.mxu0 %v4757_v24 }
 0x256   : > { %1324 = vmatprep.subr.bf16.mxu1 %v4732_v25  ;;  %3622 = vmatprep.subr.bf16.mxu0 %v5269_v35 }
 0x258   : > { %1296 = vmatmul.mubr.bf16.gmra.mrb[24].mxu1 %v6141_v16  ;;  %1462 = vmatmul.mubr.bf16.vlgmr.msra.gmra.mrb[32].mxu0 %v6052_v1 }
 0x259   : > { %1325 = vmatpush1.bf16.msra.mxu1 %v4731_v28  ;;  %1305 = vmatprep.mubr.bf16.mxu1 %v5787_v43 }
 0x25a   : > { %1326 = vmatprep.subr.bf16.mxu1 %v4740_v29  ;;  %1471 = vmatprep.mubr.bf16.mxu0 %v5787_v43 }
 0x25b   : > { %3623 = vmatpush1.bf16.msra.mxu0 %v5267_v39 }
 0x25d   : > { %1327 = vmatpush1.bf16.msra.mxu1 %v4739_v32 }
 0x25e   : > { %1328 = vmatprep.subr.bf16.mxu1 %v4748_v33 }
 0x260   : > { %1306 = vmatmul.mubr.bf16.gmra.mrb[28].mxu1 %v6139_v13  ;;  %1472 = vmatmul.mubr.bf16.gmra.mrb[36].mxu0 %v6050_v0 }
 0x261   : > { %1329 = vmatpush1.bf16.msra.mxu1 %v4747_v36  ;;  %1348 = vmatprep.mubr.bf16.mxu1 %v5787_v43  ;;  %v5272_v36 = vld [vmem:[%s7433_s7 + $0xc] ss:$16 sps:$4 sm:$0xff]  }
 0x262   : > { %1330 = vmatprep.subr.bf16.mxu1 %v4756_v37  ;;  %1481 = vmatprep.mubr.bf16.mxu0 %v5787_v43 }
 0x265   : > { %1331 = vmatpush1.bf16.msra.mxu1 %v4755_v40  ;;  %v5270_v40 = vld [vmem:[%s7433_s7 + $0x8] ss:$16 sps:$4 sm:$0xff]  }
 0x266   : > { %1542 = vmatprep.subr.bf16.mxu1 %v4704_v41 }
 0x268   : > { %1349 = vmatmul.mubr.bf16.vlgmr.msra.gmra.mrb[32].mxu1 %v6052_v1  ;;  %1482 = vmatmul.mubr.bf16.gmra.mrb[40].mxu0 %v6074_v23 }
 0x269   : > { %1543 = vmatpush1.bf16.msra.mxu1 %v4703_v47  ;;  %1358 = vmatprep.mubr.bf16.mxu1 %v5787_v43 }
 0x26a   : > { %1491 = vmatprep.mubr.bf16.mxu0 %v5787_v43  ;;  %1544 = vmatprep.subr.bf16.mxu1 %v4712_v51 }
 0x26d   : > { %1545 = vmatpush1.bf16.msra.mxu1 %v4711_v55 }
 0x26e   : > { %1546 = vmatprep.subr.bf16.mxu1 %v4720_v56  ;;  %v5275_v56 = vld [vmem:[%s7433_s7 + $0x24] ss:$16 sps:$4 sm:$0xff]  }
 0x26f   : > { %3624 = vmatprep.subr.bf16.mxu0 %v5275_v56 }
 0x270   : > { %1359 = vmatmul.mubr.bf16.gmra.mrb[36].mxu1 %v6050_v0  ;;  %1492 = vmatmul.mubr.bf16.gmra.mrb[44].mxu0 %v6072_v21 }
 0x271   : > { %1368 = vmatprep.mubr.bf16.mxu1 %v5787_v43  ;;  %1501 = vmatprep.mubr.bf16.mxu0 %v5787_v43 }
 0x272   : > { %1547 = vmatpush1.bf16.msra.mxu1 %v4719_v59 }
 0x273   : > { %1548 = vmatprep.subr.bf16.mxu1 %v4728_v60  ;;  %v5273_v60 = vld [vmem:[%s7433_s7 + $0x20] ss:$16 sps:$4 sm:$0xff]  }
 0x274   : > { %3625 = vmatpush1.bf16.msra.mxu0 %v5273_v60 }
 0x275   : > { %3626 = vmatprep.subr.bf16.mxu0 %v5281_v3 }
 0x276   : > { %1549 = vmatpush1.bf16.msra.mxu1 %v4727_v63 }
 0x277   : > { %1550 = vmatprep.subr.bf16.mxu1 %v4736_v2 }
 0x278   : > { %1369 = vmatmul.mubr.bf16.gmra.mrb[40].mxu1 %v6074_v23  ;;  %1502 = vmatmul.mubr.bf16.gmra.mrb[48].mxu0 %v6102_v52 }
 0x279   : > { %1378 = vmatprep.mubr.bf16.mxu1 %v5787_v43  ;;  %1511 = vmatprep.mubr.bf16.mxu0 %v5787_v43 }
 0x27a   : > { %1551 = vmatpush1.bf16.msra.mxu1 %v4735_v5  ;;  %3627 = vmatpush1.bf16.msra.mxu0 %v5279_v8 }
 0x27b   : > { %1552 = vmatprep.subr.bf16.mxu1 %v4744_v6 }
 0x27e   : > { %1553 = vmatpush1.bf16.msra.mxu1 %v4743_v9  ;;  %v5282_v9 = vld [vmem:[%s7433_s7 + $0x48] ss:$16 sps:$4 sm:$0xff]  }
 0x27f   : > { %1554 = vmatprep.subr.bf16.mxu1 %v4752_v10 }
 0x280   : > { %1379 = vmatmul.mubr.bf16.gmra.mrb[44].mxu1 %v6072_v21  ;;  %1512 = vmatmul.mubr.bf16.gmra.mrb[52].mxu0 %v6100_v50 }
 0x281   : > { %1388 = vmatprep.mubr.bf16.mxu1 %v5787_v43  ;;  %1521 = vmatprep.mubr.bf16.mxu0 %v5787_v43 }
 0x282   : > { %1555 = vmatpush1.bf16.msra.mxu1 %v4751_v45 }
 0x283   : > { %1556 = vmatprep.subr.bf16.mxu1 %v4760_v46 }
 0x286   : > { %1557 = vmatpush1.bf16.msra.mxu1 %v4759_v48 }
 0x287   : > { %3786 = vmatprep.subr.bf16.mxu1 %v5272_v36 }
 0x288   : > { %1389 = vmatmul.mubr.bf16.gmra.mrb[48].mxu1 %v6102_v52  ;;  %1522 = vmatmul.mubr.bf16.gmra.mrb[56].mxu0 %v6141_v16 }
 0x289   : > { %1398 = vmatprep.mubr.bf16.mxu1 %v5787_v43  ;;  %1531 = vmatprep.mubr.bf16.mxu0 %v5787_v43 }
 0x290   : > { %1399 = vmatmul.mubr.bf16.gmra.mrb[52].mxu1 %v6100_v50  ;;  %1532 = vmatmul.mubr.bf16.gmra.mrb[60].mxu0 %v6139_v13 }
 0x291   : > { %1408 = vmatprep.mubr.bf16.mxu1 %v5787_v43 }
 0x298   : > { %1409 = vmatmul.mubr.bf16.gmra.mrb[56].mxu1 %v6141_v16 }
 0x299   : > { %1418 = vmatprep.mubr.bf16.mxu1 %v5787_v43 }
 0x2a0   : > { %1419 = vmatmul.mubr.bf16.gmra.mrb[60].mxu1 %v6139_v13 }
 0x2a1   : > { %1574 = vmatprep.mubr.bf16.mxu1 %v5787_v43 }
 0x2a8   : > { %1575 = vmatmul.mubr.bf16.vlgmr.msra.gmra.mrb[64].mxu1 %v6052_v1 }
 0x2a9   : > { %1584 = vmatprep.mubr.bf16.mxu1 %v5787_v43  ;;  %3787 = vmatpush1.bf16.msra.mxu1 %v5270_v40 }
 0x2aa   : > { %3788 = vmatprep.subr.bf16.mxu1 %v5278_v57 }
 0x2ad   : > { %3789 = vmatpush1.bf16.msra.mxu1 %v5276_v61 }
 0x2ae   : > { %3790 = vmatprep.subr.bf16.mxu1 %v5284_v4 }
 0x2b0   : > { %1585 = vmatmul.mubr.bf16.gmra.mrb[68].mxu1 %v6050_v0 }
 0x2b1   : > { %1594 = vmatprep.mubr.bf16.mxu1 %v5787_v43  ;;  %3791 = vmatpush1.bf16.msra.mxu1 %v5282_v9  ;;  %v5311_v9 = vld [vmem:[%s7433_s7 + $0xe4] ss:$16 sps:$4 sm:$0xff]  }
 0x2b8   : > { %1595 = vmatmul.mubr.bf16.gmra.mrb[72].mxu1 %v6074_v23 }
 0x2b9   : > { %1604 = vmatprep.mubr.bf16.mxu1 %v5787_v43 }
 0x2c0   : > { %1605 = vmatmul.mubr.bf16.gmra.mrb[76].mxu1 %v6072_v21 }
 0x2c1   : > { %1614 = vmatprep.mubr.bf16.mxu1 %v5787_v43 }
 0x2c8   : > { %1615 = vmatmul.mubr.bf16.gmra.mrb[80].mxu1 %v6102_v52 }
 0x2c9   : > { %1624 = vmatprep.mubr.bf16.mxu1 %v5787_v43 }
 0x2d0   : > { %1625 = vmatmul.mubr.bf16.gmra.mrb[84].mxu1 %v6100_v50 }
 0x2d1   : > { %1634 = vmatprep.mubr.bf16.mxu1 %v5787_v43 }
 0x2d8   : > { %1635 = vmatmul.mubr.bf16.gmra.mrb[88].mxu1 %v6141_v16 }
 0x2d9   : > { %1644 = vmatprep.mubr.bf16.mxu1 %v5787_v43 }
 0x2e0   : > { %1645 = vmatmul.mubr.bf16.gmra.mrb[92].mxu1 %v6139_v13 }
 0x30b   : > { %v1237_v0 = vpop.f32.mrb[16].mxu0 }
 0x30c   : > { %v1239_v1 = vpop.f32.mrb[17].mxu0 }
 0x30d   : > { %v1241_v23 = vpop.f32.mrb[18].mxu0 }
 0x30e   : > { %v1655_v21 = vpack.c.bf16 %v1241_v23, %v1237_v0  ;;  %v1243_v49 = vpop.f32.mrb[19].mxu0 }
 0x30f   : > { %v1656_v14 = vpack.c.bf16 %v1243_v49, %v1239_v1  ;;  %v5287_v49 = vld [vmem:[%s7433_s7 + $0x64] ss:$16 sps:$4 sm:$0xff]  }
 0x310   : > { %3628 = vmatprep.subr.bf16.mxu0 %v5287_v49 }
 0x313   : > { %v1247_v15 = vpop.f32.mrb[20].mxu0 }
 0x314   : > { %v1249_v52 = vpop.f32.mrb[21].mxu0 }
 0x315   : > { %v1251_v17 = vpop.f32.mrb[22].mxu0 }
 0x316   : > { %v1663_v18 = vpack.c.bf16 %v1251_v17, %v1247_v15  ;;  %v1253_v19 = vpop.f32.mrb[23].mxu0  ;;  %v5285_v17 = vld [vmem:[%s7433_s7 + $0x60] ss:$16 sps:$4 sm:$0xff]  }
 0x317   : > { %v1664_v50 = vpack.c.bf16 %v1253_v19, %v1249_v52  ;;  %3629 = vmatpush1.bf16.msra.mxu0 %v5285_v17 }
 0x318   : > { %v1758_v20 = vmax.bf16 %v1663_v18, %v1655_v21  ;;  %v5288_v18 = vld [vmem:[%s7433_s7 + $0x68] ss:$16 sps:$4 sm:$0xff]  }
 0x319   : > { %v1775_v22 = vmax.bf16 %v1664_v50, %v1656_v14  ;;  %v5290_v14 = vld [vmem:[%s7433_s7 + $0x6c] ss:$16 sps:$4 sm:$0xff]  }
 0x31a   : > { %3792 = vmatprep.subr.bf16.mxu1 %v5290_v14  ;;  %v5317_v14 = vld [vmem:[%s7433_s7 + $0x104] ss:$16 sps:$4 sm:$0xff]  }
 0x31b   : > { %v1257_v24 = vpop.f32.mrb[24].mxu0  ;;  %v1277_v16 = vpop.f32.mrb[16].mxu1  ;;  %3793 = vmatpush1.bf16.msra.mxu1 %v5288_v18 }
 0x31c   : > { %v1259_v25 = vpop.f32.mrb[25].mxu0  ;;  %v1279_v43 = vpop.f32.mrb[17].mxu1 }
 0x31d   : > { %v1261_v26 = vpop.f32.mrb[26].mxu0  ;;  %v1281_v13 = vpop.f32.mrb[18].mxu1 }
 0x31e   : > { %v1671_v27 = vpack.c.bf16 %v1261_v26, %v1257_v24  ;;  %v1687_v28 = vpack.c.bf16 %v1281_v13, %v1277_v16  ;;  %v1263_v29 = vpop.f32.mrb[27].mxu0  ;;  %v1283_v30 = vpop.f32.mrb[19].mxu1 }
 0x31f   : > { %v1672_v31 = vpack.c.bf16 %v1263_v29, %v1259_v25  ;;  %v1688_v32 = vpack.c.bf16 %v1283_v30, %v1279_v43  ;;  %v5291_v25 = vld [vmem:[%s7433_s7 + $0x80] ss:$16 sps:$4 sm:$0xff]   ;;  %v5294_v43 = vld [vmem:[%s7433_s7 + $0x88] ss:$16 sps:$4 sm:$0xff]  }
 0x320   : > { %v1759_v33 = vmax.bf16 %v1758_v20, %v1671_v27  ;;  %v5293_v20 = vld [vmem:[%s7433_s7 + $0x84] ss:$16 sps:$4 sm:$0xff]  }
 0x321   : > { %v1776_v34 = vmax.bf16 %v1775_v22, %v1672_v31  ;;  %v5296_v22 = vld [vmem:[%s7433_s7 + $0x8c] ss:$16 sps:$4 sm:$0xff]   ;;  %3630 = vmatprep.subr.bf16.mxu0 %v5293_v20 }
 0x322   : > { %3794 = vmatprep.subr.bf16.mxu1 %v5296_v22  ;;  %3631 = vmatpush1.bf16.msra.mxu0 %v5291_v25 }
 0x323   : > { %v1267_v37 = vpop.f32.mrb[28].mxu0  ;;  %v1287_v38 = vpop.f32.mrb[20].mxu1  ;;  %3795 = vmatpush1.bf16.msra.mxu1 %v5294_v43 }
 0x324   : > { %v1269_v41 = vpop.f32.mrb[29].mxu0  ;;  %v1289_v42 = vpop.f32.mrb[21].mxu1 }
 0x325   : > { %v1271_v44 = vpop.f32.mrb[30].mxu0  ;;  %v1291_v47 = vpop.f32.mrb[22].mxu1 }
 0x326   : > { %v1679_v51 = vpack.c.bf16 %v1271_v44, %v1267_v37  ;;  %v1695_v53 = vpack.c.bf16 %v1291_v47, %v1287_v38  ;;  %v1273_v54 = vpop.f32.mrb[31].mxu0  ;;  %v1293_v55 = vpop.f32.mrb[23].mxu1  ;;  %v5297_v37 = vld [vmem:[%s7433_s7 + $0xa0] ss:$16 sps:$4 sm:$0xff]   ;;  %v5300_v38 = vld [vmem:[%s7433_s7 + $0xa8] ss:$16 sps:$4 sm:$0xff]  }
 0x327   : > { %v1680_v58 = vpack.c.bf16 %v1273_v54, %v1269_v41  ;;  %v1696_v59 = vpack.c.bf16 %v1293_v55, %v1289_v42 }
 0x328   : > { %v1760_v62 = vmax.bf16 %v1759_v33, %v1679_v51  ;;  %v5299_v33 = vld [vmem:[%s7433_s7 + $0xa4] ss:$16 sps:$4 sm:$0xff]  }
 0x329   : > { %v1777_v63 = vmax.bf16 %v1776_v34, %v1680_v58  ;;  %v5302_v34 = vld [vmem:[%s7433_s7 + $0xac] ss:$16 sps:$4 sm:$0xff]   ;;  %3632 = vmatprep.subr.bf16.mxu0 %v5299_v33  ;;  %v5305_v51 = vld [vmem:[%s7433_s7 + $0xc4] ss:$16 sps:$4 sm:$0xff]   ;;  %v5303_v58 = vld [vmem:[%s7433_s7 + $0xc0] ss:$16 sps:$4 sm:$0xff]  }
 0x32a   : > { %v1761_v2 = vmax.bf16 %v1760_v62, %v1687_v28  ;;  %3796 = vmatprep.subr.bf16.mxu1 %v5302_v34  ;;  %3633 = vmatpush1.bf16.msra.mxu0 %v5297_v37  ;;  %v5321_v34 = vld [vmem:[%s7433_s7 + $0x120] ss:$16 sps:$4 sm:$0xff]  }
 0x32b   : > { %v1778_v5 = vmax.bf16 %v1777_v63, %v1688_v32  ;;  %v1297_v6 = vpop.f32.mrb[24].mxu1  ;;  %v1463_v7 = vpop.f32.mrb[32].mxu0  ;;  %3797 = vmatpush1.bf16.msra.mxu1 %v5300_v38  ;;  %3634 = vmatprep.subr.bf16.mxu0 %v5305_v51 }
 0x32c   : > { %v1762_v10 = vmax.bf16 %v1761_v2, %v1695_v53  ;;  %v1299_v11 = vpop.f32.mrb[25].mxu1  ;;  %v1465_v12 = vpop.f32.mrb[33].mxu0  ;;  %v5308_v53 = vld [vmem:[%s7433_s7 + $0xcc] ss:$16 sps:$4 sm:$0xff]  }
 0x32d   : > { %v1779_v45 = vmax.bf16 %v1778_v5, %v1696_v59  ;;  %v1301_v46 = vpop.f32.mrb[26].mxu1  ;;  %v1467_v48 = vpop.f32.mrb[34].mxu0  ;;  %v5306_v59 = vld [vmem:[%s7433_s7 + $0xc8] ss:$16 sps:$4 sm:$0xff]   ;;  %3798 = vmatprep.subr.bf16.mxu1 %v5308_v53 }
 0x32e   : > { %v1703_v0 = vpack.c.bf16 %v1301_v46, %v1297_v6  ;;  %v1659_v1 = vpack.c.bf16 %v1467_v48, %v1463_v7  ;;  %v1303_v23 = vpop.f32.mrb[27].mxu1  ;;  %v1469_v21 = vpop.f32.mrb[35].mxu0  ;;  %3635 = vmatpush1.bf16.msra.mxu0 %v5303_v58  ;;  %v5312_v46 = vld [vmem:[%s7433_s7 + $0xe8] ss:$16 sps:$4 sm:$0xff]  }
 0x32f   : > { %v1704_v15 = vpack.c.bf16 %v1303_v23, %v1299_v11  ;;  %v1660_v52 = vpack.c.bf16 %v1469_v21, %v1465_v12  ;;  %3799 = vmatpush1.bf16.msra.mxu1 %v5306_v59  ;;  %3636 = vmatprep.subr.bf16.mxu0 %v5311_v9 }
 0x330   : > { %v1763_v19 = vmax.bf16 %v1762_v10, %v1703_v0 }
 0x331   : > { %v1780_v50 = vmax.bf16 %v1779_v45, %v1704_v15  ;;  %v5309_v45 = vld [vmem:[%s7433_s7 + $0xe0] ss:$16 sps:$4 sm:$0xff]   ;;  %v5320_v15 = vld [vmem:[%s7433_s7 + $0x10c] ss:$16 sps:$4 sm:$0xff]  }
 0x332   : > { %3637 = vmatpush1.bf16.msra.mxu0 %v5309_v45 }
 0x333   : > { %v1307_v24 = vpop.f32.mrb[28].mxu1  ;;  %v1473_v16 = vpop.f32.mrb[36].mxu0  ;;  %3638 = vmatprep.subr.bf16.mxu0 %v5317_v14 }
 0x334   : > { %v1309_v26 = vpop.f32.mrb[29].mxu1  ;;  %v1475_v13 = vpop.f32.mrb[37].mxu0 }
 0x335   : > { %v1311_v27 = vpop.f32.mrb[30].mxu1  ;;  %v1477_v28 = vpop.f32.mrb[38].mxu0 }
 0x336   : > { %v1711_v29 = vpack.c.bf16 %v1311_v27, %v1307_v24  ;;  %v1667_v30 = vpack.c.bf16 %v1477_v28, %v1473_v16  ;;  %v1313_v31 = vpop.f32.mrb[31].mxu1  ;;  %v1479_v32 = vpop.f32.mrb[39].mxu0  ;;  %v5318_v24 = vld [vmem:[%s7433_s7 + $0x108] ss:$16 sps:$4 sm:$0xff]  }
 0x337   : > { %v1712_v35 = vpack.c.bf16 %v1313_v31, %v1309_v26  ;;  %v1668_v36 = vpack.c.bf16 %v1479_v32, %v1475_v13 }
 0x338   : > { %v1764_v39 = vmax.bf16 %v1763_v19, %v1711_v29  ;;  %v1826_v40 = vmax.bf16 %v1667_v30, %v1659_v1  ;;  %v5314_v1 = vld [vmem:[%s7433_s7 + $0xec] ss:$16 sps:$4 sm:$0xff]   ;;  %v5315_v19 = vld [vmem:[%s7433_s7 + $0x100] ss:$16 sps:$4 sm:$0xff]   ;;  %v5323_v30 = vld [vmem:[%s7433_s7 + $0x124] ss:$16 sps:$4 sm:$0xff]  }
 0x339   : > { %v1781_v41 = vmax.bf16 %v1780_v50, %v1712_v35  ;;  %v1843_v42 = vmax.bf16 %v1668_v36, %v1660_v52  ;;  %3800 = vmatprep.subr.bf16.mxu1 %v5314_v1  ;;  %3639 = vmatpush1.bf16.msra.mxu0 %v5315_v19  ;;  %v5324_v35 = vld [vmem:[%s7433_s7 + $0x128] ss:$16 sps:$4 sm:$0xff]  }
 0x33a   : > { %v1765_v44 = vunpack.i.l.bf16 %v1764_v39  ;;  %v1766_v47 = vunpack.i.h.bf16 %v1764_v39  ;;  %3801 = vmatpush1.bf16.msra.mxu1 %v5312_v46  ;;  %3640 = vmatprep.subr.bf16.mxu0 %v5323_v30  ;;  %v5326_v39 = vld [vmem:[%s7433_s7 + $0x12c] ss:$16 sps:$4 sm:$0xff]  }
 0x33b   : > { %v1782_v54 = vunpack.i.l.bf16 %v1781_v41  ;;  %v1783_v55 = vunpack.i.h.bf16 %v1781_v41  ;;  %v6347_v56 = vpop.f32.mrb[32].mxu1  ;;  %v1483_v57 = vpop.f32.mrb[40].mxu0  ;;  %3802 = vmatprep.subr.bf16.mxu1 %v5320_v15  ;;  %v5344_v15 = vld [vmem:[%s7433_s7 + $0x18c] ss:$16 sps:$4 sm:$0xff]  }
 0x33c   : > { %v1767_v60 = vmax.f32 %v1765_v44, %v1766_v47  ;;  %v6355_v61 = vpop.f32.mrb[33].mxu1  ;;  %v1485_v62 = vpop.f32.mrb[41].mxu0 }
 0x33d   : > { %v1784_v63 = vmax.f32 %v1782_v54, %v1783_v55  ;;  %v1354_v2 = vpop.f32.mrb[34].mxu1  ;;  %v1487_v3 = vpop.f32.mrb[42].mxu0  ;;  %3641 = vmatpush1.bf16.msra.mxu0 %v5321_v34  ;;  %v5348_v34 = vld [vmem:[%s7433_s7 + $0x1a8] ss:$16 sps:$4 sm:$0xff]  }
 0x33e   : > { %v1768_v4 = vrot.slane %v1767_v60, 4  ;;  %v1657_v5 = vpack.c.bf16 %v1354_v2, %v6347_v56  ;;  %v1675_v6 = vpack.c.bf16 %v1487_v3, %v1483_v57  ;;  %v1356_v7 = vpop.f32.mrb[35].mxu1  ;;  %v1489_v8 = vpop.f32.mrb[43].mxu0  ;;  %3803 = vmatpush1.bf16.msra.mxu1 %v5318_v24  ;;  %v5327_v3 = vld [vmem:[%s7433_s7 + $0x140] ss:$16 sps:$4 sm:$0xff]  }
 0x33f   : > { %v1785_v10 = vrot.slane %v1784_v63, 4  ;;  %v1658_v11 = vpack.c.bf16 %v1356_v7, %v6355_v61  ;;  %v1676_v12 = vpack.c.bf16 %v1489_v8, %v1485_v62  ;;  %3804 = vmatprep.subr.bf16.mxu1 %v5326_v39  ;;  %v5330_v7 = vld [vmem:[%s7433_s7 + $0x148] ss:$16 sps:$4 sm:$0xff]   ;;  %v5347_v24 = vld [vmem:[%s7433_s7 + $0x1a4] ss:$16 sps:$4 sm:$0xff]  }
 0x340   : > { %v1769_v48 = vmax.f32 %v1767_v60, %v1768_v4  ;;  %v1827_v0 = vmax.bf16 %v1826_v40, %v1675_v6  ;;  %v5329_v4 = vld [vmem:[%s7433_s7 + $0x144] ss:$16 sps:$4 sm:$0xff]  }
 0x341   : > { %v1786_v23 = vmax.f32 %v1784_v63, %v1785_v10  ;;  %v1844_v21 = vmax.bf16 %v1843_v42, %v1676_v12  ;;  %3642 = vmatprep.subr.bf16.mxu0 %v5329_v4  ;;  %v5332_v10 = vld [vmem:[%s7433_s7 + $0x14c] ss:$16 sps:$4 sm:$0xff]   ;;  %v5335_v12 = vld [vmem:[%s7433_s7 + $0x164] ss:$16 sps:$4 sm:$0xff]   ;;  %v5360_v4 = vld [vmem:[%s7433_s7 + $0x1e8] ss:$16 sps:$4 sm:$0xff]  }
 0x342   : > { %v1770_v49 = vrot.slane %v1769_v48, 2  ;;  %3805 = vmatpush1.bf16.msra.mxu1 %v5324_v35  ;;  %3643 = vmatpush1.bf16.msra.mxu0 %v5327_v3 }
 0x343   : > { %v1787_v52 = vrot.slane %v1786_v23, 2  ;;  %v1360_v17 = vpop.f32.mrb[36].mxu1  ;;  %v1493_v18 = vpop.f32.mrb[44].mxu0  ;;  %3806 = vmatprep.subr.bf16.mxu1 %v5332_v10  ;;  %3644 = vmatprep.subr.bf16.mxu0 %v5335_v12 }
 0x344   : > { %v1771_v50 = vmax.f32 %v1769_v48, %v1770_v49  ;;  %v1362_v20 = vpop.f32.mrb[37].mxu1  ;;  %v1495_v22 = vpop.f32.mrb[45].mxu0  ;;  %v5338_v48 = vld [vmem:[%s7433_s7 + $0x16c] ss:$16 sps:$4 sm:$0xff]  }
 0x345   : > { %v1788_v16 = vmax.f32 %v1786_v23, %v1787_v52  ;;  %v1364_v25 = vpop.f32.mrb[38].mxu1  ;;  %v1497_v43 = vpop.f32.mrb[46].mxu0  ;;  %v5336_v23 = vld [vmem:[%s7433_s7 + $0x168] ss:$16 sps:$4 sm:$0xff]  }
 0x346   : > { %v1772_v26 = vrot.slane %v1771_v50, 1  ;;  %v1665_v13 = vpack.c.bf16 %v1364_v25, %v1360_v17  ;;  %v1683_v27 = vpack.c.bf16 %v1497_v43, %v1493_v18  ;;  %v1366_v28 = vpop.f32.mrb[39].mxu1  ;;  %v1499_v29 = vpop.f32.mrb[47].mxu0  ;;  %3807 = vmatpush1.bf16.msra.mxu1 %v5330_v7  ;;  %v5342_v43 = vld [vmem:[%s7433_s7 + $0x188] ss:$16 sps:$4 sm:$0xff]  }
 0x347   : > { %v1789_v31 = vrot.slane %v1788_v16, 1  ;;  %v1666_v32 = vpack.c.bf16 %v1366_v28, %v1362_v20  ;;  %v1684_v33 = vpack.c.bf16 %v1499_v29, %v1495_v22  ;;  %3808 = vmatprep.subr.bf16.mxu1 %v5338_v48  ;;  %v5345_v28 = vld [vmem:[%s7433_s7 + $0x1a0] ss:$16 sps:$4 sm:$0xff]   ;;  %v5368_v7 = vld [vmem:[%s7433_s7 + $0x20c] ss:$16 sps:$4 sm:$0xff]  }
 0x348   : > { %v1773_v36 = vmax.f32 %v1771_v50, %v1772_v26  ;;  %v1792_v37 = vmax.bf16 %v1665_v13, %v1657_v5  ;;  %v1828_v38 = vmax.bf16 %v1827_v0, %v1683_v27  ;;  %v5339_v50 = vld [vmem:[%s7433_s7 + $0x180] ss:$16 sps:$4 sm:$0xff]   ;;  %v5350_v27 = vld [vmem:[%s7433_s7 + $0x1ac] ss:$16 sps:$4 sm:$0xff]  }
 0x349   : > { %v1790_v40 = vmax.f32 %v1788_v16, %v1789_v31  ;;  %v1809_v41 = vmax.bf16 %v1666_v32, %v1658_v11  ;;  %v1845_v42 = vmax.bf16 %v1844_v21, %v1684_v33  ;;  %v5333_v11 = vld [vmem:[%s7433_s7 + $0x160] ss:$16 sps:$4 sm:$0xff]   ;;  %v5341_v21 = vld [vmem:[%s7433_s7 + $0x184] ss:$16 sps:$4 sm:$0xff]  }
 0x34a   : > { %v1774_v44 = vpack.i.bf16 %v1773_v36, %v1773_v36  ;;  %3645 = vmatpush1.bf16.msra.mxu0 %v5333_v11  ;;  %3809 = vmatpush1.bf16.msra.mxu1 %v5336_v23  ;;  %v5353_v31 = vld [vmem:[%s7433_s7 + $0x1c4] ss:$16 sps:$4 sm:$0xff]  }
 0x34b   : > { %v1791_v47 = vpack.i.bf16 %v1790_v40, %v1790_v40  ;;  %v1370_v51 = vpop.f32.mrb[40].mxu1  ;;  %v1503_v53 = vpop.f32.mrb[48].mxu0  ;;  %3646 = vmatprep.subr.bf16.mxu0 %v5341_v21  ;;  %3810 = vmatprep.subr.bf16.mxu1 %v5344_v15 }
 0x34c   : > { %v1372_v54 = vpop.f32.mrb[41].mxu1  ;;  %v1505_v55 = vpop.f32.mrb[49].mxu0 }
 0x34d   : > { %v6395_v56 = vcombine.low %v1774_v44, %v1791_v47  ;;  %v1374_v57 = vpop.f32.mrb[42].mxu1  ;;  %v1507_v58 = vpop.f32.mrb[50].mxu0 }
 0x34e   : > { %v1673_v59 = vpack.c.bf16 %v1374_v57, %v1370_v51  ;;  %v1691_v60 = vpack.c.bf16 %v1507_v58, %v1503_v53  ;;  %v1376_v61 = vpop.f32.mrb[43].mxu1  ;;  %v1509_v62 = vpop.f32.mrb[51].mxu0  ;;  %3647 = vmatpush1.bf16.msra.mxu0 %v5339_v50  ;;  %3811 = vmatpush1.bf16.msra.mxu1 %v5342_v43  ;;  %v5359_v51 = vld [vmem:[%s7433_s7 + $0x1e4] ss:$16 sps:$4 sm:$0xff]  }
 0x34f   : > { %v1674_v63 = vpack.c.bf16 %v1376_v61, %v1372_v54  ;;  %v1692_v2 = vpack.c.bf16 %v1509_v62, %v1505_v55  ;;  %3648 = vmatprep.subr.bf16.mxu0 %v5347_v24  ;;  %3812 = vmatprep.subr.bf16.mxu1 %v5350_v27  ;;  %v5354_v55 = vld [vmem:[%s7433_s7 + $0x1c8] ss:$16 sps:$4 sm:$0xff]  }
 0x350   : > { %v1793_v5 = vmax.bf16 %v1792_v37, %v1673_v59  ;;  %v1829_v6 = vmax.bf16 %v1828_v38, %v1691_v60  ;;  %v5356_v37 = vld [vmem:[%s7433_s7 + $0x1cc] ss:$16 sps:$4 sm:$0xff]   ;;  %v5357_v60 = vld [vmem:[%s7433_s7 + $0x1e0] ss:$16 sps:$4 sm:$0xff]  }
 0x351   : > { %v1810_v8 = vmax.bf16 %v1809_v41, %v1674_v63  ;;  %v1846_v9 = vmax.bf16 %v1845_v42, %v1692_v2  ;;  %v5351_v42 = vld [vmem:[%s7433_s7 + $0x1c0] ss:$16 sps:$4 sm:$0xff]   ;;  %v5362_v59 = vld [vmem:[%s7433_s7 + $0x1ec] ss:$16 sps:$4 sm:$0xff]   ;;  %v5365_v63 = vld [vmem:[%s7433_s7 + $0x204] ss:$16 sps:$4 sm:$0xff]  }
 0x352   : > { %3649 = vmatpush1.bf16.msra.mxu0 %v5345_v28  ;;  %3813 = vmatpush1.bf16.msra.mxu1 %v5348_v34 }
 0x353   : > { %v1380_v45 = vpop.f32.mrb[44].mxu1  ;;  %v1513_v46 = vpop.f32.mrb[52].mxu0  ;;  %3650 = vmatprep.subr.bf16.mxu0 %v5353_v31  ;;  %3814 = vmatprep.subr.bf16.mxu1 %v5356_v37 }
 0x354   : > { %v1382_v0 = vpop.f32.mrb[45].mxu1  ;;  %v1515_v1 = vpop.f32.mrb[53].mxu0 }
 0x355   : > { %v1384_v49 = vpop.f32.mrb[46].mxu1  ;;  %v1517_v14 = vpop.f32.mrb[54].mxu0 }
 0x356   : > { %v1681_v52 = vpack.c.bf16 %v1384_v49, %v1380_v45  ;;  %v1699_v17 = vpack.c.bf16 %v1517_v14, %v1513_v46  ;;  %v1386_v18 = vpop.f32.mrb[47].mxu1  ;;  %v1519_v19 = vpop.f32.mrb[55].mxu0  ;;  %3651 = vmatpush1.bf16.msra.mxu0 %v5351_v42  ;;  %3815 = vmatpush1.bf16.msra.mxu1 %v5354_v55 }
 0x357   : > { %v1682_v20 = vpack.c.bf16 %v1386_v18, %v1382_v0  ;;  %v1700_v22 = vpack.c.bf16 %v1519_v19, %v1515_v1  ;;  %3652 = vmatprep.subr.bf16.mxu0 %v5359_v51  ;;  %3816 = vmatprep.subr.bf16.mxu1 %v5362_v59 }
 0x358   : > { %v1794_v16 = vmax.bf16 %v1793_v5, %v1681_v52  ;;  %v1830_v25 = vmax.bf16 %v1829_v6, %v1699_v17 }
 0x359   : > { %v1811_v26 = vmax.bf16 %v1810_v8, %v1682_v20  ;;  %v1847_v13 = vmax.bf16 %v1846_v9, %v1700_v22 }
 0x35a   : > { %3653 = vmatpush1.bf16.msra.mxu0 %v5357_v60  ;;  %3817 = vmatpush1.bf16.msra.mxu1 %v5360_v4 }
 0x35b   : > { %v1390_v29 = vpop.f32.mrb[48].mxu1  ;;  %v1523_v30 = vpop.f32.mrb[56].mxu0  ;;  %3663 = vmatprep.subr.bf16.mxu0 %v5365_v63  ;;  %3827 = vmatprep.subr.bf16.mxu1 %v5368_v7 }
 0x35c   : > { %v1392_v32 = vpop.f32.mrb[49].mxu1  ;;  %v1525_v33 = vpop.f32.mrb[57].mxu0 }
 0x35d   : > { %v1394_v35 = vpop.f32.mrb[50].mxu1  ;;  %v1527_v36 = vpop.f32.mrb[58].mxu0 }
 0x35e   : > { %v1689_v38 = vpack.c.bf16 %v1394_v35, %v1390_v29  ;;  %v1707_v39 = vpack.c.bf16 %v1527_v36, %v1523_v30  ;;  %v1396_v40 = vpop.f32.mrb[51].mxu1  ;;  %v1529_v41 = vpop.f32.mrb[59].mxu0 }
 0x35f   : > { %v1690_v44 = vpack.c.bf16 %v1396_v40, %v1392_v32  ;;  %v1708_v47 = vpack.c.bf16 %v1529_v41, %v1525_v33 }
 0x360   : > { %v1795_v53 = vmax.bf16 %v1794_v16, %v1689_v38  ;;  %v1831_v54 = vmax.bf16 %v1830_v25, %v1707_v39 }
 0x361   : > { %v1812_v57 = vmax.bf16 %v1811_v26, %v1690_v44  ;;  %v1848_v58 = vmax.bf16 %v1847_v13, %v1708_v47 }
 0x363   : > { %v1400_v61 = vpop.f32.mrb[52].mxu1  ;;  %v1533_v62 = vpop.f32.mrb[60].mxu0 }
 0x364   : > { %v1402_v2 = vpop.f32.mrb[53].mxu1  ;;  %v1535_v3 = vpop.f32.mrb[61].mxu0 }
 0x365   : > { %v1404_v5 = vpop.f32.mrb[54].mxu1  ;;  %v1537_v6 = vpop.f32.mrb[62].mxu0 }
 0x366   : > { %v1697_v8 = vpack.c.bf16 %v1404_v5, %v1400_v61  ;;  %v1715_v9 = vpack.c.bf16 %v1537_v6, %v1533_v62  ;;  %v1406_v10 = vpop.f32.mrb[55].mxu1  ;;  %v1539_v11 = vpop.f32.mrb[63].mxu0 }
 0x367   : > { %v1698_v12 = vpack.c.bf16 %v1406_v10, %v1402_v2  ;;  %v1716_v45 = vpack.c.bf16 %v1539_v11, %v1535_v3  ;;  %v1909_v11 = vlaneseq }
 0x368   : > { %v1796_v46 = vmax.bf16 %v1795_v53, %v1697_v8  ;;  %v1832_v48 = vmax.bf16 %v1831_v54, %v1715_v9  ;;  %v5788_v9 = vmov 1966171168  }
 0x369   : > { %v1813_v0 = vmax.bf16 %v1812_v57, %v1698_v12  ;;  %v1849_v1 = vmax.bf16 %v1848_v58, %v1716_v45  ;;  %v1907_v10 = vunpack.c.l.s4 %v5788_v9 }
 0x36a   : > { %v1833_v23 = vunpack.i.l.bf16 %v1832_v48  ;;  %v1834_v21 = vunpack.i.h.bf16 %v1832_v48 }
 0x36b   : > { %v1850_v49 = vunpack.i.l.bf16 %v1849_v1  ;;  %v1851_v14 = vunpack.i.h.bf16 %v1849_v1  ;;  %v1410_v15 = vpop.f32.mrb[56].mxu1 }
 0x36c   : > { %v1835_v52 = vmax.f32 %v1833_v23, %v1834_v21  ;;  %v1412_v17 = vpop.f32.mrb[57].mxu1 }
 0x36d   : > { %v1852_v18 = vmax.f32 %v1850_v49, %v1851_v14  ;;  %v1414_v19 = vpop.f32.mrb[58].mxu1  ;;  %v1908_v14 = vunpack.c.0.s8 %v1907_v10 }
 0x36e   : > { %v1836_v50 = vrot.slane %v1835_v52, 4  ;;  %v1705_v20 = vpack.c.bf16 %v1414_v19, %v1410_v15  ;;  %v1416_v22 = vpop.f32.mrb[59].mxu1  ;;  %v6477_v15 = vshrl.u32 %v1909_v11, 7 }
 0x36f   : > { %v1853_v24 = vrot.slane %v1852_v18, 4  ;;  %v1706_v16 = vpack.c.bf16 %v1416_v22, %v1412_v17 }
 0x370   : > { %v1837_v25 = vmax.f32 %v1835_v52, %v1836_v50  ;;  %v1797_v43 = vmax.bf16 %v1796_v46, %v1705_v20 }
 0x371   : > { %v1854_v26 = vmax.f32 %v1852_v18, %v1853_v24  ;;  %v1814_v13 = vmax.bf16 %v1813_v0, %v1706_v16  ;;  %v6480_v24 = vsub.s32 %v1908_v14, %v6477_v15 }
 0x372   : > { %v1838_v27 = vrot.slane %v1837_v25, 2 }
 0x373   : > { %v1855_v28 = vrot.slane %v1854_v26, 2  ;;  %v1420_v29 = vpop.f32.mrb[60].mxu1 }
 0x374   : > { %v1839_v30 = vmax.f32 %v1837_v25, %v1838_v27  ;;  %v1422_v31 = vpop.f32.mrb[61].mxu1 }
 0x375   : > { %v1856_v32 = vmax.f32 %v1854_v26, %v1855_v28  ;;  %v1424_v33 = vpop.f32.mrb[62].mxu1 }
 0x376   : > { %v1840_v34 = vrot.slane %v1839_v30, 1  ;;  %v1713_v35 = vpack.c.bf16 %v1424_v33, %v1420_v29  ;;  %v1426_v36 = vpop.f32.mrb[63].mxu1  ;;  %v1912_v29 = vrot.slane %v6395_v56, %v6480_v24 }
 0x377   : > { %v1857_v37 = vrot.slane %v1856_v32, 1  ;;  %v1714_v38 = vpack.c.bf16 %v1426_v36, %v1422_v31 }
 0x378   : > { %v1841_v39 = vmax.f32 %v1839_v30, %v1840_v34  ;;  %v1798_v40 = vmax.bf16 %v1797_v43, %v1713_v35 }
 0x379   : > { %v1858_v41 = vmax.f32 %v1856_v32, %v1857_v37  ;;  %v1815_v42 = vmax.bf16 %v1814_v13, %v1714_v38 }
 0x37a   : > { %v1842_v44 = vpack.i.bf16 %v1841_v39, %v1841_v39  ;;  %v1799_v47 = vunpack.i.l.bf16 %v1798_v40  ;;  %v1800_v51 = vunpack.i.h.bf16 %v1798_v40 }
 0x37b   : > { %v1859_v53 = vpack.i.bf16 %v1858_v41, %v1858_v41  ;;  %v1816_v54 = vunpack.i.l.bf16 %v1815_v42  ;;  %v1817_v55 = vunpack.i.h.bf16 %v1815_v42  ;;  %v1576_v57 = vpop.f32.mrb[64].mxu1 }
 0x37c   : > { %v1801_v58 = vmax.f32 %v1799_v47, %v1800_v51  ;;  %v1578_v59 = vpop.f32.mrb[65].mxu1 }
 0x37d   : > { %v6475_v60 = vcombine.low %v1842_v44, %v1859_v53  ;;  %v1818_v61 = vmax.f32 %v1816_v54, %v1817_v55  ;;  %v1580_v62 = vpop.f32.mrb[66].mxu1 }
 0x37e   : > { %v1802_v63 = vrot.slane %v1801_v58, 4  ;;  %v1661_v2 = vpack.c.bf16 %v1580_v62, %v1576_v57  ;;  %v1582_v3 = vpop.f32.mrb[67].mxu1 }
 0x37f   : > { %v1819_v4 = vrot.slane %v1818_v61, 4  ;;  %v1662_v5 = vpack.c.bf16 %v1582_v3, %v1578_v59 }
 0x380   : > { %v1803_v6 = vmax.f32 %v1801_v58, %v1802_v63 }
 0x381   : > { %v1820_v7 = vmax.f32 %v1818_v61, %v1819_v4 }
 0x382   : > { %v1804_v8 = vrot.slane %v1803_v6, 2 }
 0x383   : > { %v1821_v12 = vrot.slane %v1820_v7, 2  ;;  %v1586_v45 = vpop.f32.mrb[68].mxu1 }
 0x384   : > { %v1805_v46 = vmax.f32 %v1803_v6, %v1804_v8  ;;  %v1588_v48 = vpop.f32.mrb[69].mxu1 }
 0x385   : > { %v1822_v0 = vmax.f32 %v1820_v7, %v1821_v12  ;;  %v1590_v1 = vpop.f32.mrb[70].mxu1 }
 0x386   : > { %v1806_v23 = vrot.slane %v1805_v46, 1  ;;  %v1669_v21 = vpack.c.bf16 %v1590_v1, %v1586_v45  ;;  %v1592_v49 = vpop.f32.mrb[71].mxu1 }
 0x387   : > { %v1823_v52 = vrot.slane %v1822_v0, 1  ;;  %v1670_v17 = vpack.c.bf16 %v1592_v49, %v1588_v48 }
 0x388   : > { %v1807_v18 = vmax.f32 %v1805_v46, %v1806_v23  ;;  %v1860_v19 = vmax.bf16 %v1669_v21, %v1661_v2 }
 0x389   : > { %v1824_v50 = vmax.f32 %v1822_v0, %v1823_v52  ;;  %v1877_v20 = vmax.bf16 %v1670_v17, %v1662_v5 }
 0x38a   : > { %v1808_v22 = vpack.i.bf16 %v1807_v18, %v1807_v18 }
 0x38b   : > { %v1825_v16 = vpack.i.bf16 %v1824_v50, %v1824_v50  ;;  %v1596_v25 = vpop.f32.mrb[72].mxu1 }
 0x38c   : > { %v1598_v43 = vpop.f32.mrb[73].mxu1 }
 0x38d   : > { %v1903_v26 = vcombine.low %v1808_v22, %v1825_v16  ;;  %v1600_v13 = vpop.f32.mrb[74].mxu1 }
 0x38e   : > { %v1677_v27 = vpack.c.bf16 %v1600_v13, %v1596_v25  ;;  %v1602_v28 = vpop.f32.mrb[75].mxu1 }
 0x38f   : > { %v1919_v30 = vrot.slane %v1903_v26, %v6480_v24  ;;  %v1678_v31 = vpack.c.bf16 %v1602_v28, %v1598_v43 }
 0x390   : > { %v1861_v32 = vmax.bf16 %v1860_v19, %v1677_v27 }
 0x391   : > { %v6485_v33 = vcombine.low %v1912_v29, %v1919_v30  ;;  %v1878_v34 = vmax.bf16 %v1877_v20, %v1678_v31  ;;  %v5381_v30 = vld [vmem:[%s7433_s7 + $0x260] ss:$16 sps:$4 sm:$0xff]  }
 0x393   : > { %v1606_v35 = vpop.f32.mrb[76].mxu1 }
 0x394   : > { %v1608_v36 = vpop.f32.mrb[77].mxu1 }
 0x395   : > { %v1610_v37 = vpop.f32.mrb[78].mxu1 }
 0x396   : > { %v1685_v38 = vpack.c.bf16 %v1610_v37, %v1606_v35  ;;  %v1612_v39 = vpop.f32.mrb[79].mxu1 }
 0x397   : > { %v1686_v40 = vpack.c.bf16 %v1612_v39, %v1608_v36 }
 0x398   : > { %v1862_v41 = vmax.bf16 %v1861_v32, %v1685_v38 }
 0x399   : > { %v1879_v42 = vmax.bf16 %v1878_v34, %v1686_v40  ;;  %v5789_v40 = vmov 857870592   ;;  %v5392_v34 = vld [vmem:[%s7433_s7 + $0x28c] ss:$16 sps:$4 sm:$0xff]  }
 0x39b   : > { %v1616_v44 = vpop.f32.mrb[80].mxu1 }
 0x39c   : > { %v1618_v47 = vpop.f32.mrb[81].mxu1 }
 0x39d   : > { %v1620_v51 = vpop.f32.mrb[82].mxu1 }
 0x39e   : > { %v1693_v53 = vpack.c.bf16 %v1620_v51, %v1616_v44  ;;  %v1622_v56 = vpop.f32.mrb[83].mxu1 }
 0x39f   : > { %v1694_v54 = vpack.c.bf16 %v1622_v56, %v1618_v47  ;;  %v1926_v56 = vrot.slane %v6475_v60, %v6480_v24  ;;  %v5402_v47 = vld [vmem:[%s7433_s7 + $0x2c8] ss:$16 sps:$4 sm:$0xff]  }
 0x3a0   : > { %v1863_v55 = vmax.bf16 %v1862_v41, %v1693_v53  ;;  %v1995_v41 = vunpack.c.l.s4 %v5789_v40  ;;  %v5396_v40 = vld [vmem:[%s7433_s7 + $0x2a8] ss:$16 sps:$4 sm:$0xff]   ;;  %v5410_v53 = vld [vmem:[%s7433_s7 + $0x2ec] ss:$16 sps:$4 sm:$0xff]  }
 0x3a1   : > { %v1880_v57 = vmax.bf16 %v1879_v42, %v1694_v54  ;;  %v5790_v42 = vmov 2003195204  }
 0x3a2   : > { %v2002_v44 = vunpack.c.l.s4 %v5790_v42  ;;  %v5404_v42 = vld [vmem:[%s7433_s7 + $0x2cc] ss:$16 sps:$4 sm:$0xff]  }
 0x3a3   : > { %v1626_v58 = vpop.f32.mrb[84].mxu1 }
 0x3a4   : > { %v1628_v59 = vpop.f32.mrb[85].mxu1 }
 0x3a5   : > { %v1630_v61 = vpop.f32.mrb[86].mxu1 }
 0x3a6   : > { %v1701_v62 = vpack.c.bf16 %v1630_v61, %v1626_v58  ;;  %v1632_v63 = vpop.f32.mrb[87].mxu1  ;;  %v1754_v58 = vld [vmem:[#allocation2] sm:$0xff]  ;;  %v1942_v61 = vrot.slane %v6485_v33, %v6480_v24 }
 0x3a7   : > { %v1702_v2 = vpack.c.bf16 %v1632_v63, %v1628_v59  ;;  %v1755_v63 = vsel %vm1753_vm1, 4286644096, %v1754_v58  ;;  %v5411_v58 = vld [vmem:[%s7433_s7 + $0x300] ss:$16 sps:$4 sm:$0xff]  }
 0x3a8   : > { %v1864_v3 = vmax.bf16 %v1863_v55, %v1701_v62  ;;  %v1996_v55 = vunpack.c.0.s8 %v1995_v41  ;;  %v5401_v41 = vld [vmem:[%s7433_s7 + $0x2c4] ss:$16 sps:$4 sm:$0xff]  }
 0x3a9   : > { %v1881_v4 = vmax.bf16 %v1880_v57, %v1702_v2  ;;  %v2003_v57 = vunpack.c.0.s8 %v2002_v44  ;;  %v5399_v44 = vld [vmem:[%s7433_s7 + $0x2c0] ss:$16 sps:$4 sm:$0xff]  }
 0x3aa   : > { %v1999_v2 = vsub.s32 %v1996_v55, %v6477_v15  ;;  %v5413_v55 = vld [vmem:[%s7433_s7 + $0x304] ss:$16 sps:$4 sm:$0xff]  }
 0x3ab   : > { %v1636_v5 = vpop.f32.mrb[88].mxu1  ;;  %v2006_v60 = vsub.s32 %v2003_v57, %v6477_v15  ;;  %v5416_v57 = vld [vmem:[%s7433_s7 + $0x30c] ss:$16 sps:$4 sm:$0xff]  }
 0x3ac   : > { %v1638_v6 = vpop.f32.mrb[89].mxu1 }
 0x3ad   : > { %v1640_v7 = vpop.f32.mrb[90].mxu1 }
 0x3ae   : > { %v1709_v8 = vpack.c.bf16 %v1640_v7, %v1636_v5  ;;  %v1642_v9 = vpop.f32.mrb[91].mxu1 }
 0x3af   : > { %v1710_v10 = vpack.c.bf16 %v1642_v9, %v1638_v6 }
 0x3b0   : > { %v1865_v11 = vmax.bf16 %v1864_v3, %v1709_v8 }
 0x3b1   : > { %v1882_v12 = vmax.bf16 %v1881_v4, %v1710_v10  ;;  %v1992_v4 = vld [vmem:[%s7432_s6] sm:$0xff] }
 0x3b2   : > { %v2000_v6 = vrot.slane %v1992_v4, %v1999_v2  ;;  %v2007_v7 = vrot.slane %v1992_v4, %v2006_v60  ;;  %v5420_v2 = vld [vmem:[%s7433_s7 + $0x328] ss:$16 sps:$4 sm:$0xff]   ;;  %v5425_v60 = vld [vmem:[%s7433_s7 + $0x344] ss:$16 sps:$4 sm:$0xff]   ;;  %v5423_v4 = vld [vmem:[%s7433_s7 + $0x340] ss:$16 sps:$4 sm:$0xff]  }
 0x3b3   : > { %v1646_v45 = vpop.f32.mrb[92].mxu1 }
 0x3b4   : > { %v1648_v46 = vpop.f32.mrb[93].mxu1 }
 0x3b5   : > { %v1650_v48 = vpop.f32.mrb[94].mxu1 }
 0x3b6   : > { %v1717_v1 = vpack.c.bf16 %v1650_v48, %v1646_v45  ;;  %v1652_v23 = vpop.f32.mrb[95].mxu1  ;;  %v2030_v45 = vsub.s32 6, %v6477_v15 }
 0x3b7   : > { %v1718_v49 = vpack.c.bf16 %v1652_v23, %v1648_v46  ;;  %v2026_v46 = vsub.s32 4, %v6477_v15 }
 0x3b8   : > { %v1866_v14 = vmax.bf16 %v1865_v11, %v1717_v1  ;;  %v6544_v11 = vsub.s32 0, %v6477_v15 }
 0x3b9   : > { %v1883_v52 = vmax.bf16 %v1882_v12, %v1718_v49 }
 0x3ba   : > { %v1867_v17 = vunpack.i.l.bf16 %v1866_v14  ;;  %v1868_v18 = vunpack.i.h.bf16 %v1866_v14 }
 0x3bb   : > { %v1884_v19 = vunpack.i.l.bf16 %v1883_v52  ;;  %v1885_v50 = vunpack.i.h.bf16 %v1883_v52 }
 0x3bc   : > { %v1869_v20 = vmax.f32 %v1867_v17, %v1868_v18  ;;  %v5363_v17 = vld [vmem:[%s7433_s7 + $0x200] ss:$16 sps:$4 sm:$0xff]   ;;  %v5366_v18 = vld [vmem:[%s7433_s7 + $0x208] ss:$16 sps:$4 sm:$0xff]  }
 0x3bd   : > { %v1886_v16 = vmax.f32 %v1884_v19, %v1885_v50  ;;  %v5371_v50 = vld [vmem:[%s7433_s7 + $0x224] ss:$16 sps:$4 sm:$0xff]  }
 0x3be   : > { %v1870_v25 = vrot.slane %v1869_v20, 4 }
 0x3bf   : > { %v1887_v43 = vrot.slane %v1886_v16, 4 }
 0x3c0   : > { %v1871_v26 = vmax.f32 %v1869_v20, %v1870_v25  ;;  %v5374_v20 = vld [vmem:[%s7433_s7 + $0x22c] ss:$16 sps:$4 sm:$0xff]   ;;  %v5372_v25 = vld [vmem:[%s7433_s7 + $0x228] ss:$16 sps:$4 sm:$0xff]  }
 0x3c1   : > { %v1888_v13 = vmax.f32 %v1886_v16, %v1887_v43  ;;  %v5369_v16 = vld [vmem:[%s7433_s7 + $0x220] ss:$16 sps:$4 sm:$0xff]   ;;  %v5377_v43 = vld [vmem:[%s7433_s7 + $0x244] ss:$16 sps:$4 sm:$0xff]  }
 0x3c2   : > { %v1872_v27 = vrot.slane %v1871_v26, 2 }
 0x3c3   : > { %v1889_v28 = vrot.slane %v1888_v13, 2 }
 0x3c4   : > { %v1873_v29 = vmax.f32 %v1871_v26, %v1872_v27  ;;  %v5380_v26 = vld [vmem:[%s7433_s7 + $0x24c] ss:$16 sps:$4 sm:$0xff]   ;;  %v5378_v27 = vld [vmem:[%s7433_s7 + $0x248] ss:$16 sps:$4 sm:$0xff]  }
 0x3c5   : > { %v1890_v31 = vmax.f32 %v1888_v13, %v1889_v28  ;;  %v5375_v13 = vld [vmem:[%s7433_s7 + $0x240] ss:$16 sps:$4 sm:$0xff]   ;;  %v5383_v28 = vld [vmem:[%s7433_s7 + $0x264] ss:$16 sps:$4 sm:$0xff]  }
 0x3c6   : > { %v1874_v32 = vrot.slane %v1873_v29, 1 }
 0x3c7   : > { %v1891_v35 = vrot.slane %v1890_v31, 1 }
 0x3c8   : > { %v1875_v36 = vmax.f32 %v1873_v29, %v1874_v32  ;;  %v5386_v29 = vld [vmem:[%s7433_s7 + $0x26c] ss:$16 sps:$4 sm:$0xff]   ;;  %v5389_v32 = vld [vmem:[%s7433_s7 + $0x284] ss:$16 sps:$4 sm:$0xff]  }
 0x3c9   : > { %v1892_v37 = vmax.f32 %v1890_v31, %v1891_v35  ;;  %v5384_v31 = vld [vmem:[%s7433_s7 + $0x268] ss:$16 sps:$4 sm:$0xff]   ;;  %v5387_v35 = vld [vmem:[%s7433_s7 + $0x280] ss:$16 sps:$4 sm:$0xff]  }
 0x3ca   : > { %v1876_v38 = vpack.i.bf16 %v1875_v36, %v1875_v36  ;;  %v5390_v36 = vld [vmem:[%s7433_s7 + $0x288] ss:$16 sps:$4 sm:$0xff]  }
 0x3cb   : > { %v1893_v39 = vpack.i.bf16 %v1892_v37, %v1892_v37  ;;  %v5395_v37 = vld [vmem:[%s7433_s7 + $0x2a4] ss:$16 sps:$4 sm:$0xff]  }
 0x3cd   : > { %v1905_v51 = vcombine.low %v1876_v38, %v1893_v39  ;;  %v5398_v38 = vld [vmem:[%s7433_s7 + $0x2ac] ss:$16 sps:$4 sm:$0xff]   ;;  %v5393_v39 = vld [vmem:[%s7433_s7 + $0x2a0] ss:$16 sps:$4 sm:$0xff]  }
 0x3cf   : > { %v1933_v54 = vrot.slane %v1905_v51, %v6480_v24  ;;  %v5407_v51 = vld [vmem:[%s7433_s7 + $0x2e4] ss:$16 sps:$4 sm:$0xff]  }
 0x3d1   : > { %v1935_v59 = vcombine.low %v1926_v56, %v1933_v54  ;;  %v5405_v56 = vld [vmem:[%s7433_s7 + $0x2e0] ss:$16 sps:$4 sm:$0xff]   ;;  %v5408_v54 = vld [vmem:[%s7433_s7 + $0x2e8] ss:$16 sps:$4 sm:$0xff]  }
 0x3d3   : > { %v1949_v62 = vrot.slane %v1935_v59, %v6480_v24  ;;  %v6541_v24 = vsub.s32 2, %v6477_v15  ;;  %v5414_v59 = vld [vmem:[%s7433_s7 + $0x308] ss:$16 sps:$4 sm:$0xff]  }
 0x3d5   : > { %v1950_v3 = vcombine.low %v1942_v61, %v1949_v62  ;;  %v5419_v61 = vld [vmem:[%s7433_s7 + $0x324] ss:$16 sps:$4 sm:$0xff]   ;;  %v5422_v62 = vld [vmem:[%s7433_s7 + $0x32c] ss:$16 sps:$4 sm:$0xff]  }
 0x3d7   : > { %v1952_v5 = vmax.bf16 %v1950_v3, %v1755_v63  ;;  %v5428_v3 = vld [vmem:[%s7433_s7 + $0x34c] ss:$16 sps:$4 sm:$0xff]  }
 0x3d9   : > { %v1984_v8 = vsel %vm1753_vm1, %v1952_v5, %v1755_v63  ;;  %v5417_v63 = vld [vmem:[%s7433_s7 + $0x320] ss:$16 sps:$4 sm:$0xff]   ;;  %v5426_v5 = vld [vmem:[%s7433_s7 + $0x348] ss:$16 sps:$4 sm:$0xff]  }
 0x3da   : > { %1985 = vst [vmem:[#allocation2] sm:$0xff] %v1984_v8  ;;  %v1990_v9 = vunpack.c.l.bf16 %v1984_v8  ;;  %v1991_v10 = vunpack.c.h.bf16 %v1984_v8  ;;  %v5429_v8 = vld [vmem:[%s7433_s7 + $0x360] ss:$16 sps:$4 sm:$0xff]  }
 0x3dc   : > { %v2010_v33 = vadd.f32 %v2000_v6, %v1990_v9  ;;  %v2011_v12 = vadd.f32 %v2007_v7, %v1991_v10  ;;  %v5431_v6 = vld [vmem:[%s7433_s7 + $0x364] ss:$16 sps:$4 sm:$0xff]   ;;  %v5434_v7 = vld [vmem:[%s7433_s7 + $0x36c] ss:$16 sps:$4 sm:$0xff]   ;;  %v5432_v9 = vld [vmem:[%s7433_s7 + $0x368] ss:$16 sps:$4 sm:$0xff]  }
 0x3dd   : > { %v5437_v10 = vld [vmem:[%s7433_s7 + $0x384] ss:$16 sps:$4 sm:$0xff]  }
 0x3de   : > { %v6548_v48 = vmax.f32 %v2010_v33, 0.0  ;;  %v6550_v0 = vmax.f32 %v2011_v12, 0.0  ;;  %v5440_v33 = vld [vmem:[%s7433_s7 + $0x38c] ss:$16 sps:$4 sm:$0xff]   ;;  %v5435_v12 = vld [vmem:[%s7433_s7 + $0x380] ss:$16 sps:$4 sm:$0xff]  }
 0x3e0   : > { %v2023_v1 = vrot.slane %v6548_v48, %v6541_v24  ;;  %v2019_v23 = vrot.slane %v6548_v48, %v6544_v11  ;;  %v2031_v21 = vrot.slane %v6548_v48, %v2030_v45  ;;  %v6558_v49 = vrot.slane %v6550_v0, %v2030_v45  ;;  %v5438_v45 = vld [vmem:[%s7433_s7 + $0x388] ss:$16 sps:$4 sm:$0xff]  }
 0x3e1   : > { %v6563_v14 = vrot.slane %v6550_v0, %v2026_v46 }
 0x3e2   : > { %v2057_v52 = vpack.c.bf16 %v2023_v1, %v2023_v1  ;;  %v2056_v19 = vpack.c.bf16 %v2019_v23, %v2019_v23  ;;  %v2059_v22 = vpack.c.bf16 %v2031_v21, %v2031_v21  ;;  %v5443_v1 = vld [vmem:[%s7433_s7 + $0x3a4] ss:$16 sps:$4 sm:$0xff]   ;;  %v5446_v23 = vld [vmem:[%s7433_s7 + $0x3ac] ss:$16 sps:$4 sm:$0xff]   ;;  %v5441_v21 = vld [vmem:[%s7433_s7 + $0x3a0] ss:$16 sps:$4 sm:$0xff]  }
 0x3e4   : > { %3654 = vmatprep.mubr.bf16.mxu0 %v2057_v52  ;;  %3818 = vmatprep.mubr.bf16.mxu1 %v2057_v52  ;;  %v5444_v52 = vld [vmem:[%s7433_s7 + $0x3a8] ss:$16 sps:$4 sm:$0xff]  }
 0x3e5   : > { %3655 = vmatmul.mubr.bf16.vlgmr.msra.gmra.mrb[64].mxu0 %v2056_v19  ;;  %3819 = vmatmul.mubr.bf16.vlgmr.msra.gmra.mrb[96].mxu1 %v2056_v19  ;;  %v5447_v19 = vld [vmem:[%s7433_s7 + $0x3c0] ss:$16 sps:$4 sm:$0xff]  }
 0x3e6   : > { %3664 = vmatpush1.bf16.msra.mxu0 %v5363_v17  ;;  %3828 = vmatpush1.bf16.msra.mxu1 %v5366_v18  ;;  %v5449_v17 = vld [vmem:[%s7433_s7 + $0x3c4] ss:$16 sps:$4 sm:$0xff]   ;;  %v5452_v18 = vld [vmem:[%s7433_s7 + $0x3cc] ss:$16 sps:$4 sm:$0xff]  }
 0x3e7   : > { %3695 = vmatprep.mubr.bf16.mxu0 %v2059_v22  ;;  %3859 = vmatprep.mubr.bf16.mxu1 %v2059_v22  ;;  %v5458_v22 = vld [vmem:[%s7433_s7 + $0x3ec] ss:$16 sps:$4 sm:$0xff]  }
 0x3e8   : > { %3665 = vmatprep.subr.bf16.mxu0 %v5371_v50  ;;  %3829 = vmatprep.subr.bf16.mxu1 %v5374_v20  ;;  %v5450_v50 = vld [vmem:[%s7433_s7 + $0x3c8] ss:$16 sps:$4 sm:$0xff]   ;;  %v5455_v20 = vld [vmem:[%s7433_s7 + $0x3e4] ss:$16 sps:$4 sm:$0xff]  }
 0x3ea   : > { %3666 = vmatpush1.bf16.msra.mxu0 %v5369_v16  ;;  %3830 = vmatpush1.bf16.msra.mxu1 %v5372_v25  ;;  %v5453_v16 = vld [vmem:[%s7433_s7 + $0x3e0] ss:$16 sps:$4 sm:$0xff]   ;;  %v5456_v25 = vld [vmem:[%s7433_s7 + $0x3e8] ss:$16 sps:$4 sm:$0xff]  }
 0x3eb   : > { %3667 = vmatprep.subr.bf16.mxu0 %v5377_v43  ;;  %3831 = vmatprep.subr.bf16.mxu1 %v5380_v26  ;;  %v2027_v43 = vrot.slane %v6548_v48, %v2026_v46  ;;  %v5461_v26 = vld [vmem:[%s7433_s7 + $0x404] ss:$16 sps:$4 sm:$0xff]   ;;  %v5462_v46 = vld [vmem:[%s7433_s7 + $0x408] ss:$16 sps:$4 sm:$0xff]  }
 0x3ee   : > { %3668 = vmatpush1.bf16.msra.mxu0 %v5375_v13  ;;  %3832 = vmatpush1.bf16.msra.mxu1 %v5378_v27  ;;  %v5464_v13 = vld [vmem:[%s7433_s7 + $0x40c] ss:$16 sps:$4 sm:$0xff]   ;;  %v2039_v27 = vrot.slane %v6550_v0, %v6541_v24 }
 0x3ef   : > { %3669 = vmatprep.subr.bf16.mxu0 %v5383_v28  ;;  %3833 = vmatprep.subr.bf16.mxu1 %v5386_v29  ;;  %v5459_v28 = vld [vmem:[%s7433_s7 + $0x400] ss:$16 sps:$4 sm:$0xff]   ;;  %v2058_v29 = vpack.c.bf16 %v2027_v43, %v2027_v43 }
 0x3f0   : > { %v2061_v48 = vpack.c.bf16 %v2039_v27, %v2039_v27  ;;  %v5537_v43 = vld [vmem:[%s7433_s7 + $0x5a0] ss:$16 sps:$4 sm:$0xff]   ;;  %v5548_v27 = vld [vmem:[%s7433_s7 + $0x5cc] ss:$16 sps:$4 sm:$0xff]  }
 0x3f2   : > { %3670 = vmatpush1.bf16.msra.mxu0 %v5381_v30  ;;  %3834 = vmatpush1.bf16.msra.mxu1 %v5384_v31  ;;  %v5467_v30 = vld [vmem:[%s7433_s7 + $0x424] ss:$16 sps:$4 sm:$0xff]   ;;  %v5470_v31 = vld [vmem:[%s7433_s7 + $0x42c] ss:$16 sps:$4 sm:$0xff]  }
 0x3f3   : > { %3671 = vmatprep.subr.bf16.mxu0 %v5389_v32  ;;  %3835 = vmatprep.subr.bf16.mxu1 %v5392_v34  ;;  %v5465_v32 = vld [vmem:[%s7433_s7 + $0x420] ss:$16 sps:$4 sm:$0xff]   ;;  %v5468_v34 = vld [vmem:[%s7433_s7 + $0x428] ss:$16 sps:$4 sm:$0xff]  }
 0x3f6   : > { %3672 = vmatpush1.bf16.msra.mxu0 %v5387_v35  ;;  %3836 = vmatpush1.bf16.msra.mxu1 %v5390_v36  ;;  %v5473_v35 = vld [vmem:[%s7433_s7 + $0x444] ss:$16 sps:$4 sm:$0xff]   ;;  %v5476_v36 = vld [vmem:[%s7433_s7 + $0x44c] ss:$16 sps:$4 sm:$0xff]  }
 0x3f7   : > { %3673 = vmatprep.subr.bf16.mxu0 %v5395_v37  ;;  %3837 = vmatprep.subr.bf16.mxu1 %v5398_v38  ;;  %v5471_v37 = vld [vmem:[%s7433_s7 + $0x440] ss:$16 sps:$4 sm:$0xff]   ;;  %v5474_v38 = vld [vmem:[%s7433_s7 + $0x448] ss:$16 sps:$4 sm:$0xff]  }
 0x3fa   : > { %3674 = vmatpush1.bf16.msra.mxu0 %v5393_v39  ;;  %3838 = vmatpush1.bf16.msra.mxu1 %v5396_v40  ;;  %v5479_v39 = vld [vmem:[%s7433_s7 + $0x464] ss:$16 sps:$4 sm:$0xff]   ;;  %v5482_v40 = vld [vmem:[%s7433_s7 + $0x46c] ss:$16 sps:$4 sm:$0xff]  }
 0x3fb   : > { %3675 = vmatprep.subr.bf16.mxu0 %v5401_v41  ;;  %3839 = vmatprep.subr.bf16.mxu1 %v5404_v42  ;;  %v5477_v41 = vld [vmem:[%s7433_s7 + $0x460] ss:$16 sps:$4 sm:$0xff]   ;;  %v5480_v42 = vld [vmem:[%s7433_s7 + $0x468] ss:$16 sps:$4 sm:$0xff]  }
 0x3fe   : > { %3676 = vmatpush1.bf16.msra.mxu0 %v5399_v44  ;;  %3840 = vmatpush1.bf16.msra.mxu1 %v5402_v47  ;;  %v5485_v44 = vld [vmem:[%s7433_s7 + $0x484] ss:$16 sps:$4 sm:$0xff]   ;;  %v5488_v47 = vld [vmem:[%s7433_s7 + $0x48c] ss:$16 sps:$4 sm:$0xff]  }
 0x3ff   : > { %3677 = vmatprep.subr.bf16.mxu0 %v5407_v51  ;;  %3841 = vmatprep.subr.bf16.mxu1 %v5410_v53  ;;  %v5483_v51 = vld [vmem:[%s7433_s7 + $0x480] ss:$16 sps:$4 sm:$0xff]   ;;  %v5486_v53 = vld [vmem:[%s7433_s7 + $0x488] ss:$16 sps:$4 sm:$0xff]  }
 0x402   : > { %3678 = vmatpush1.bf16.msra.mxu0 %v5405_v56  ;;  %3842 = vmatpush1.bf16.msra.mxu1 %v5408_v54  ;;  %v5491_v56 = vld [vmem:[%s7433_s7 + $0x4a4] ss:$16 sps:$4 sm:$0xff]   ;;  %v5494_v54 = vld [vmem:[%s7433_s7 + $0x4ac] ss:$16 sps:$4 sm:$0xff]  }
 0x403   : > { %3679 = vmatprep.subr.bf16.mxu0 %v5413_v55  ;;  %3843 = vmatprep.subr.bf16.mxu1 %v5416_v57  ;;  %v5489_v55 = vld [vmem:[%s7433_s7 + $0x4a0] ss:$16 sps:$4 sm:$0xff]   ;;  %v5492_v57 = vld [vmem:[%s7433_s7 + $0x4a8] ss:$16 sps:$4 sm:$0xff]  }
 0x406   : > { %3680 = vmatpush1.bf16.msra.mxu0 %v5411_v58  ;;  %3844 = vmatpush1.bf16.msra.mxu1 %v5414_v59  ;;  %v5497_v58 = vld [vmem:[%s7433_s7 + $0x4c4] ss:$16 sps:$4 sm:$0xff]   ;;  %v5500_v59 = vld [vmem:[%s7433_s7 + $0x4cc] ss:$16 sps:$4 sm:$0xff]  }
 0x407   : > { %3681 = vmatprep.subr.bf16.mxu0 %v5419_v61  ;;  %3845 = vmatprep.subr.bf16.mxu1 %v5422_v62  ;;  %v5495_v61 = vld [vmem:[%s7433_s7 + $0x4c0] ss:$16 sps:$4 sm:$0xff]   ;;  %v5498_v62 = vld [vmem:[%s7433_s7 + $0x4c8] ss:$16 sps:$4 sm:$0xff]  }
 0x40a   : > { %3682 = vmatpush1.bf16.msra.mxu0 %v5417_v63  ;;  %3846 = vmatpush1.bf16.msra.mxu1 %v5420_v2  ;;  %v5503_v63 = vld [vmem:[%s7433_s7 + $0x4e4] ss:$16 sps:$4 sm:$0xff]   ;;  %v5506_v2 = vld [vmem:[%s7433_s7 + $0x4ec] ss:$16 sps:$4 sm:$0xff]  }
 0x40b   : > { %3683 = vmatprep.subr.bf16.mxu0 %v5425_v60  ;;  %3847 = vmatprep.subr.bf16.mxu1 %v5428_v3  ;;  %v5501_v60 = vld [vmem:[%s7433_s7 + $0x4e0] ss:$16 sps:$4 sm:$0xff]   ;;  %v5504_v3 = vld [vmem:[%s7433_s7 + $0x4e8] ss:$16 sps:$4 sm:$0xff]  }
 0x40e   : > { %3684 = vmatpush1.bf16.msra.mxu0 %v5423_v4  ;;  %3848 = vmatpush1.bf16.msra.mxu1 %v5426_v5  ;;  %v5509_v4 = vld [vmem:[%s7433_s7 + $0x504] ss:$16 sps:$4 sm:$0xff]   ;;  %v5512_v5 = vld [vmem:[%s7433_s7 + $0x50c] ss:$16 sps:$4 sm:$0xff]  }
 0x40f   : > { %3685 = vmatprep.subr.bf16.mxu0 %v5431_v6  ;;  %3849 = vmatprep.subr.bf16.mxu1 %v5434_v7  ;;  %v5507_v6 = vld [vmem:[%s7433_s7 + $0x500] ss:$16 sps:$4 sm:$0xff]   ;;  %v5510_v7 = vld [vmem:[%s7433_s7 + $0x508] ss:$16 sps:$4 sm:$0xff]  }
 0x412   : > { %3686 = vmatpush1.bf16.msra.mxu0 %v5429_v8  ;;  %3850 = vmatpush1.bf16.msra.mxu1 %v5432_v9  ;;  %v5515_v8 = vld [vmem:[%s7433_s7 + $0x524] ss:$16 sps:$4 sm:$0xff]   ;;  %v5518_v9 = vld [vmem:[%s7433_s7 + $0x52c] ss:$16 sps:$4 sm:$0xff]  }
 0x413   : > { %3687 = vmatprep.subr.bf16.mxu0 %v5437_v10  ;;  %3851 = vmatprep.subr.bf16.mxu1 %v5440_v33  ;;  %v5513_v10 = vld [vmem:[%s7433_s7 + $0x520] ss:$16 sps:$4 sm:$0xff]   ;;  %v5516_v33 = vld [vmem:[%s7433_s7 + $0x528] ss:$16 sps:$4 sm:$0xff]  }
 0x416   : > { %3688 = vmatpush1.bf16.msra.mxu0 %v5435_v12  ;;  %3852 = vmatpush1.bf16.msra.mxu1 %v5438_v45  ;;  %v5521_v12 = vld [vmem:[%s7433_s7 + $0x544] ss:$16 sps:$4 sm:$0xff]   ;;  %v5524_v45 = vld [vmem:[%s7433_s7 + $0x54c] ss:$16 sps:$4 sm:$0xff]  }
 0x417   : > { %3689 = vmatprep.subr.bf16.mxu0 %v5443_v1  ;;  %3853 = vmatprep.subr.bf16.mxu1 %v5446_v23  ;;  %v5519_v1 = vld [vmem:[%s7433_s7 + $0x540] ss:$16 sps:$4 sm:$0xff]   ;;  %v5522_v23 = vld [vmem:[%s7433_s7 + $0x548] ss:$16 sps:$4 sm:$0xff]  }
 0x41a   : > { %3690 = vmatpush1.bf16.msra.mxu0 %v5441_v21  ;;  %3854 = vmatpush1.bf16.msra.mxu1 %v5444_v52  ;;  %v5527_v21 = vld [vmem:[%s7433_s7 + $0x564] ss:$16 sps:$4 sm:$0xff]   ;;  %v5530_v52 = vld [vmem:[%s7433_s7 + $0x56c] ss:$16 sps:$4 sm:$0xff]  }
 0x41b   : > { %3691 = vmatprep.subr.bf16.mxu0 %v5449_v17  ;;  %3855 = vmatprep.subr.bf16.mxu1 %v5452_v18  ;;  %v5525_v17 = vld [vmem:[%s7433_s7 + $0x560] ss:$16 sps:$4 sm:$0xff]   ;;  %v5528_v18 = vld [vmem:[%s7433_s7 + $0x568] ss:$16 sps:$4 sm:$0xff]  }
 0x41e   : > { %3692 = vmatpush1.bf16.msra.mxu0 %v5447_v19  ;;  %3856 = vmatpush1.bf16.msra.mxu1 %v5450_v50  ;;  %v5533_v19 = vld [vmem:[%s7433_s7 + $0x584] ss:$16 sps:$4 sm:$0xff]   ;;  %v5536_v50 = vld [vmem:[%s7433_s7 + $0x58c] ss:$16 sps:$4 sm:$0xff]  }
 0x41f   : > { %3693 = vmatprep.subr.bf16.mxu0 %v5455_v20  ;;  %3857 = vmatprep.subr.bf16.mxu1 %v5458_v22  ;;  %v5531_v20 = vld [vmem:[%s7433_s7 + $0x580] ss:$16 sps:$4 sm:$0xff]   ;;  %v5534_v22 = vld [vmem:[%s7433_s7 + $0x588] ss:$16 sps:$4 sm:$0xff]  }
 0x422   : > { %3694 = vmatpush1.bf16.msra.mxu0 %v5453_v16  ;;  %3858 = vmatpush1.bf16.msra.mxu1 %v5456_v25  ;;  %v5539_v16 = vld [vmem:[%s7433_s7 + $0x5a4] ss:$16 sps:$4 sm:$0xff]   ;;  %v5542_v25 = vld [vmem:[%s7433_s7 + $0x5ac] ss:$16 sps:$4 sm:$0xff]  }
 0x423   : > { %3704 = vmatprep.subr.bf16.mxu0 %v5461_v26  ;;  %3868 = vmatprep.subr.bf16.mxu1 %v5464_v13  ;;  %v5540_v26 = vld [vmem:[%s7433_s7 + $0x5a8] ss:$16 sps:$4 sm:$0xff]   ;;  %v5545_v13 = vld [vmem:[%s7433_s7 + $0x5c4] ss:$16 sps:$4 sm:$0xff]  }
 0x425   : > { %3696 = vmatmul.mubr.bf16.vlgmr.msra.gmra.mrb[64].mxu0 %v2058_v29  ;;  %3860 = vmatmul.mubr.bf16.vlgmr.msra.gmra.mrb[96].mxu1 %v2058_v29  ;;  %v5546_v29 = vld [vmem:[%s7433_s7 + $0x5c8] ss:$16 sps:$4 sm:$0xff]  }
 0x426   : > { %3705 = vmatpush1.bf16.msra.mxu0 %v5459_v28  ;;  %3736 = vmatprep.mubr.bf16.mxu0 %v2061_v48  ;;  %v5543_v28 = vld [vmem:[%s7433_s7 + $0x5c0] ss:$16 sps:$4 sm:$0xff]  }
 0x427   : > { %3869 = vmatpush1.bf16.msra.mxu1 %v5462_v46  ;;  %3900 = vmatprep.mubr.bf16.mxu1 %v2061_v48  ;;  %v5551_v46 = vld [vmem:[%s7433_s7 + $0x5e4] ss:$16 sps:$4 sm:$0xff]   ;;  %v5554_v48 = vld [vmem:[%s7433_s7 + $0x5ec] ss:$16 sps:$4 sm:$0xff]  }
 0x428   : > { %3706 = vmatprep.subr.bf16.mxu0 %v5467_v30  ;;  %3870 = vmatprep.subr.bf16.mxu1 %v5470_v31  ;;  %v5549_v30 = vld [vmem:[%s7433_s7 + $0x5e0] ss:$16 sps:$4 sm:$0xff]   ;;  %v5552_v31 = vld [vmem:[%s7433_s7 + $0x5e8] ss:$16 sps:$4 sm:$0xff]  }
 0x42a   : > { %3707 = vmatpush1.bf16.msra.mxu0 %v5465_v32  ;;  %v2035_v32 = vrot.slane %v6550_v0, %v6544_v11  ;;  %v5558_v0 = vld [vmem:[%s7433_s7 + $0x608] ss:$16 sps:$4 sm:$0xff]  }
 0x42b   : > { %3871 = vmatpush1.bf16.msra.mxu1 %v5468_v34  ;;  %3708 = vmatprep.subr.bf16.mxu0 %v5473_v35  ;;  %v5557_v34 = vld [vmem:[%s7433_s7 + $0x604] ss:$16 sps:$4 sm:$0xff]   ;;  %v5560_v35 = vld [vmem:[%s7433_s7 + $0x60c] ss:$16 sps:$4 sm:$0xff]  }
 0x42c   : > { %3872 = vmatprep.subr.bf16.mxu1 %v5476_v36  ;;  %v5555_v36 = vld [vmem:[%s7433_s7 + $0x600] ss:$16 sps:$4 sm:$0xff]  }
 0x42e   : > { %3709 = vmatpush1.bf16.msra.mxu0 %v5471_v37  ;;  %v2060_v37 = vpack.c.bf16 %v2035_v32, %v2035_v32  ;;  %v5644_v32 = vld [vmem:[%s7433_s7 + $0x7cc] ss:$16 sps:$4 sm:$0xff]  }
 0x42f   : > { %3873 = vmatpush1.bf16.msra.mxu1 %v5474_v38  ;;  %3710 = vmatprep.subr.bf16.mxu0 %v5479_v39  ;;  %v5563_v38 = vld [vmem:[%s7433_s7 + $0x624] ss:$16 sps:$4 sm:$0xff]   ;;  %v2063_v39 = vpack.c.bf16 %v6558_v49, %v6558_v49 }
 0x430   : > { %3874 = vmatprep.subr.bf16.mxu1 %v5482_v40  ;;  %v5566_v40 = vld [vmem:[%s7433_s7 + $0x62c] ss:$16 sps:$4 sm:$0xff]   ;;  %v5569_v49 = vld [vmem:[%s7433_s7 + $0x644] ss:$16 sps:$4 sm:$0xff]  }
 0x432   : > { %3711 = vmatpush1.bf16.msra.mxu0 %v5477_v41  ;;  %v5561_v41 = vld [vmem:[%s7433_s7 + $0x620] ss:$16 sps:$4 sm:$0xff]  }
 0x433   : > { %3875 = vmatpush1.bf16.msra.mxu1 %v5480_v42  ;;  %3712 = vmatprep.subr.bf16.mxu0 %v5485_v44  ;;  %v5564_v42 = vld [vmem:[%s7433_s7 + $0x628] ss:$16 sps:$4 sm:$0xff]   ;;  %v5572_v44 = vld [vmem:[%s7433_s7 + $0x64c] ss:$16 sps:$4 sm:$0xff]  }
 0x434   : > { %3876 = vmatprep.subr.bf16.mxu1 %v5488_v47  ;;  %v5567_v47 = vld [vmem:[%s7433_s7 + $0x640] ss:$16 sps:$4 sm:$0xff]  }
 0x436   : > { %3713 = vmatpush1.bf16.msra.mxu0 %v5483_v51  ;;  %v5570_v51 = vld [vmem:[%s7433_s7 + $0x648] ss:$16 sps:$4 sm:$0xff]  }
 0x437   : > { %3877 = vmatpush1.bf16.msra.mxu1 %v5486_v53  ;;  %3714 = vmatprep.subr.bf16.mxu0 %v5491_v56  ;;  %v5575_v53 = vld [vmem:[%s7433_s7 + $0x664] ss:$16 sps:$4 sm:$0xff]   ;;  %v5578_v56 = vld [vmem:[%s7433_s7 + $0x66c] ss:$16 sps:$4 sm:$0xff]  }
 0x438   : > { %3878 = vmatprep.subr.bf16.mxu1 %v5494_v54  ;;  %v5573_v54 = vld [vmem:[%s7433_s7 + $0x660] ss:$16 sps:$4 sm:$0xff]  }
 0x43a   : > { %3715 = vmatpush1.bf16.msra.mxu0 %v5489_v55  ;;  %v5576_v55 = vld [vmem:[%s7433_s7 + $0x668] ss:$16 sps:$4 sm:$0xff]  }
 0x43b   : > { %3879 = vmatpush1.bf16.msra.mxu1 %v5492_v57  ;;  %3716 = vmatprep.subr.bf16.mxu0 %v5497_v58  ;;  %v5581_v57 = vld [vmem:[%s7433_s7 + $0x684] ss:$16 sps:$4 sm:$0xff]   ;;  %v5584_v58 = vld [vmem:[%s7433_s7 + $0x68c] ss:$16 sps:$4 sm:$0xff]  }
 0x43c   : > { %3880 = vmatprep.subr.bf16.mxu1 %v5500_v59  ;;  %v5579_v59 = vld [vmem:[%s7433_s7 + $0x680] ss:$16 sps:$4 sm:$0xff]  }
 0x43e   : > { %3717 = vmatpush1.bf16.msra.mxu0 %v5495_v61  ;;  %v5582_v61 = vld [vmem:[%s7433_s7 + $0x688] ss:$16 sps:$4 sm:$0xff]  }
 0x43f   : > { %3881 = vmatpush1.bf16.msra.mxu1 %v5498_v62  ;;  %3718 = vmatprep.subr.bf16.mxu0 %v5503_v63  ;;  %v5587_v62 = vld [vmem:[%s7433_s7 + $0x6a4] ss:$16 sps:$4 sm:$0xff]   ;;  %v5590_v63 = vld [vmem:[%s7433_s7 + $0x6ac] ss:$16 sps:$4 sm:$0xff]  }
 0x440   : > { %3882 = vmatprep.subr.bf16.mxu1 %v5506_v2  ;;  %v5585_v2 = vld [vmem:[%s7433_s7 + $0x6a0] ss:$16 sps:$4 sm:$0xff]  }
 0x442   : > { %3719 = vmatpush1.bf16.msra.mxu0 %v5501_v60  ;;  %v5588_v60 = vld [vmem:[%s7433_s7 + $0x6a8] ss:$16 sps:$4 sm:$0xff]  }
 0x443   : > { %3883 = vmatpush1.bf16.msra.mxu1 %v5504_v3  ;;  %3720 = vmatprep.subr.bf16.mxu0 %v5509_v4  ;;  %v5593_v3 = vld [vmem:[%s7433_s7 + $0x6c4] ss:$16 sps:$4 sm:$0xff]   ;;  %v5596_v4 = vld [vmem:[%s7433_s7 + $0x6cc] ss:$16 sps:$4 sm:$0xff]  }
 0x444   : > { %3884 = vmatprep.subr.bf16.mxu1 %v5512_v5  ;;  %v5591_v5 = vld [vmem:[%s7433_s7 + $0x6c0] ss:$16 sps:$4 sm:$0xff]  }
 0x446   : > { %3721 = vmatpush1.bf16.msra.mxu0 %v5507_v6  ;;  %v5594_v6 = vld [vmem:[%s7433_s7 + $0x6c8] ss:$16 sps:$4 sm:$0xff]  }
 0x447   : > { %3885 = vmatpush1.bf16.msra.mxu1 %v5510_v7  ;;  %3722 = vmatprep.subr.bf16.mxu0 %v5515_v8  ;;  %v5599_v7 = vld [vmem:[%s7433_s7 + $0x6e4] ss:$16 sps:$4 sm:$0xff]   ;;  %v5602_v8 = vld [vmem:[%s7433_s7 + $0x6ec] ss:$16 sps:$4 sm:$0xff]  }
 0x448   : > { %3886 = vmatprep.subr.bf16.mxu1 %v5518_v9  ;;  %v5597_v9 = vld [vmem:[%s7433_s7 + $0x6e0] ss:$16 sps:$4 sm:$0xff]  }
 0x44a   : > { %3723 = vmatpush1.bf16.msra.mxu0 %v5513_v10  ;;  %v5600_v10 = vld [vmem:[%s7433_s7 + $0x6e8] ss:$16 sps:$4 sm:$0xff]  }
 0x44b   : > { %3887 = vmatpush1.bf16.msra.mxu1 %v5516_v33  ;;  %3724 = vmatprep.subr.bf16.mxu0 %v5521_v12  ;;  %v5605_v33 = vld [vmem:[%s7433_s7 + $0x704] ss:$16 sps:$4 sm:$0xff]   ;;  %v5608_v12 = vld [vmem:[%s7433_s7 + $0x70c] ss:$16 sps:$4 sm:$0xff]  }
 0x44c   : > { %3888 = vmatprep.subr.bf16.mxu1 %v5524_v45  ;;  %v5603_v45 = vld [vmem:[%s7433_s7 + $0x700] ss:$16 sps:$4 sm:$0xff]  }
 0x44e   : > { %3725 = vmatpush1.bf16.msra.mxu0 %v5519_v1  ;;  %v5606_v1 = vld [vmem:[%s7433_s7 + $0x708] ss:$16 sps:$4 sm:$0xff]  }
 0x44f   : > { %3889 = vmatpush1.bf16.msra.mxu1 %v5522_v23  ;;  %3726 = vmatprep.subr.bf16.mxu0 %v5527_v21  ;;  %v5611_v23 = vld [vmem:[%s7433_s7 + $0x724] ss:$16 sps:$4 sm:$0xff]   ;;  %v5614_v21 = vld [vmem:[%s7433_s7 + $0x72c] ss:$16 sps:$4 sm:$0xff]  }
 0x450   : > { %3890 = vmatprep.subr.bf16.mxu1 %v5530_v52  ;;  %v5609_v52 = vld [vmem:[%s7433_s7 + $0x720] ss:$16 sps:$4 sm:$0xff]  }
 0x452   : > { %3727 = vmatpush1.bf16.msra.mxu0 %v5525_v17  ;;  %v5612_v17 = vld [vmem:[%s7433_s7 + $0x728] ss:$16 sps:$4 sm:$0xff]  }
 0x453   : > { %3891 = vmatpush1.bf16.msra.mxu1 %v5528_v18  ;;  %3728 = vmatprep.subr.bf16.mxu0 %v5533_v19  ;;  %v5617_v18 = vld [vmem:[%s7433_s7 + $0x744] ss:$16 sps:$4 sm:$0xff]   ;;  %v5620_v19 = vld [vmem:[%s7433_s7 + $0x74c] ss:$16 sps:$4 sm:$0xff]  }
 0x454   : > { %3892 = vmatprep.subr.bf16.mxu1 %v5536_v50  ;;  %v5615_v50 = vld [vmem:[%s7433_s7 + $0x740] ss:$16 sps:$4 sm:$0xff]  }
 0x456   : > { %3729 = vmatpush1.bf16.msra.mxu0 %v5531_v20  ;;  %v5618_v20 = vld [vmem:[%s7433_s7 + $0x748] ss:$16 sps:$4 sm:$0xff]  }
 0x457   : > { %3893 = vmatpush1.bf16.msra.mxu1 %v5534_v22  ;;  %3730 = vmatprep.subr.bf16.mxu0 %v5539_v16  ;;  %v5623_v22 = vld [vmem:[%s7433_s7 + $0x764] ss:$16 sps:$4 sm:$0xff]   ;;  %v5626_v16 = vld [vmem:[%s7433_s7 + $0x76c] ss:$16 sps:$4 sm:$0xff]  }
 0x458   : > { %3894 = vmatprep.subr.bf16.mxu1 %v5542_v25  ;;  %v5621_v25 = vld [vmem:[%s7433_s7 + $0x760] ss:$16 sps:$4 sm:$0xff]  }
 0x45a   : > { %3731 = vmatpush1.bf16.msra.mxu0 %v5537_v43  ;;  %v5624_v43 = vld [vmem:[%s7433_s7 + $0x768] ss:$16 sps:$4 sm:$0xff]  }
 0x45b   : > { %3895 = vmatpush1.bf16.msra.mxu1 %v5540_v26  ;;  %3732 = vmatprep.subr.bf16.mxu0 %v5545_v13  ;;  %v5629_v26 = vld [vmem:[%s7433_s7 + $0x784] ss:$16 sps:$4 sm:$0xff]   ;;  %v5632_v13 = vld [vmem:[%s7433_s7 + $0x78c] ss:$16 sps:$4 sm:$0xff]  }
 0x45c   : > { %3896 = vmatprep.subr.bf16.mxu1 %v5548_v27  ;;  %v5627_v27 = vld [vmem:[%s7433_s7 + $0x780] ss:$16 sps:$4 sm:$0xff]  }
 0x45e   : > { %3733 = vmatpush1.bf16.msra.mxu0 %v5543_v28  ;;  %v5630_v28 = vld [vmem:[%s7433_s7 + $0x788] ss:$16 sps:$4 sm:$0xff]  }
 0x45f   : > { %3897 = vmatpush1.bf16.msra.mxu1 %v5546_v29  ;;  %3734 = vmatprep.subr.bf16.mxu0 %v5551_v46  ;;  %v5635_v29 = vld [vmem:[%s7433_s7 + $0x7a4] ss:$16 sps:$4 sm:$0xff]   ;;  %v5638_v46 = vld [vmem:[%s7433_s7 + $0x7ac] ss:$16 sps:$4 sm:$0xff]  }
 0x460   : > { %3898 = vmatprep.subr.bf16.mxu1 %v5554_v48  ;;  %v5633_v48 = vld [vmem:[%s7433_s7 + $0x7a0] ss:$16 sps:$4 sm:$0xff]  }
 0x462   : > { %3735 = vmatpush1.bf16.msra.mxu0 %v5549_v30  ;;  %v5636_v30 = vld [vmem:[%s7433_s7 + $0x7a8] ss:$16 sps:$4 sm:$0xff]  }
 0x463   : > { %3899 = vmatpush1.bf16.msra.mxu1 %v5552_v31  ;;  %3745 = vmatprep.subr.bf16.mxu0 %v5557_v34  ;;  %v5641_v31 = vld [vmem:[%s7433_s7 + $0x7c4] ss:$16 sps:$4 sm:$0xff]   ;;  %v5639_v34 = vld [vmem:[%s7433_s7 + $0x7c0] ss:$16 sps:$4 sm:$0xff]  }
 0x464   : > { %3909 = vmatprep.subr.bf16.mxu1 %v5560_v35  ;;  %v5642_v35 = vld [vmem:[%s7433_s7 + $0x7c8] ss:$16 sps:$4 sm:$0xff]  }
 0x465   : > { %3737 = vmatmul.mubr.bf16.vlgmr.msra.gmra.mrb[64].mxu0 %v2060_v37 }
 0x466   : > { %3901 = vmatmul.mubr.bf16.vlgmr.msra.gmra.mrb[96].mxu1 %v2060_v37  ;;  %3746 = vmatpush1.bf16.msra.mxu0 %v5555_v36  ;;  %v5647_v36 = vld [vmem:[%s7433_s7 + $0x7e4] ss:$16 sps:$4 sm:$0xff]   ;;  %v5650_v37 = vld [vmem:[%s7433_s7 + $0x7ec] ss:$16 sps:$4 sm:$0xff]  }
 0x467   : > { %3777 = vmatprep.mubr.bf16.mxu0 %v2063_v39  ;;  %3910 = vmatpush1.bf16.msra.mxu1 %v5558_v0  ;;  %v5645_v0 = vld [vmem:[%s7433_s7 + $0x7e0] ss:$16 sps:$4 sm:$0xff]  }
 0x468   : > { %3941 = vmatprep.mubr.bf16.mxu1 %v2063_v39  ;;  %3747 = vmatprep.subr.bf16.mxu0 %v5563_v38  ;;  %v5648_v38 = vld [vmem:[%s7433_s7 + $0x7e8] ss:$16 sps:$4 sm:$0xff]   ;;  %v5653_v39 = vld [vmem:[%s7435_s9 + $0x4] ss:$8 sps:$4 sm:$0xff]  }
 0x469   : > { %3911 = vmatprep.subr.bf16.mxu1 %v5566_v40  ;;  %v5651_v40 = vld [vmem:[%s7435_s9] ss:$8 sps:$4 sm:$0xff]  }
 0x46a   : > { %3748 = vmatpush1.bf16.msra.mxu0 %v5561_v41  ;;  %v2062_v41 = vpack.c.bf16 %v6563_v14, %v6563_v14  ;;  %v5657_v14 = vld [vmem:[%s7435_s9 + $0x20] ss:$8 sps:$4 sm:$0xff]  }
 0x46b   : > { %3912 = vmatpush1.bf16.msra.mxu1 %v5564_v42  ;;  %3749 = vmatprep.subr.bf16.mxu0 %v5569_v49  ;;  %v5656_v42 = vld [vmem:[%s7435_s9 + $0x14] ss:$8 sps:$4 sm:$0xff]   ;;  %v5654_v49 = vld [vmem:[%s7435_s9 + $0x10] ss:$8 sps:$4 sm:$0xff]  }
 0x46c   : > { %3913 = vmatprep.subr.bf16.mxu1 %v5572_v44  ;;  %v5659_v44 = vld [vmem:[%s7435_s9 + $0x24] ss:$8 sps:$4 sm:$0xff]  }
 0x46e   : > { %3750 = vmatpush1.bf16.msra.mxu0 %v5567_v47  ;;  %v5662_v47 = vld [vmem:[%s7435_s9 + $0x34] ss:$8 sps:$4 sm:$0xff]  }
 0x46f   : > { %3914 = vmatpush1.bf16.msra.mxu1 %v5570_v51  ;;  %3751 = vmatprep.subr.bf16.mxu0 %v5575_v53  ;;  %v5660_v51 = vld [vmem:[%s7435_s9 + $0x30] ss:$8 sps:$4 sm:$0xff]   ;;  %v5665_v53 = vld [vmem:[%s7435_s9 + $0x44] ss:$8 sps:$4 sm:$0xff]  }
 0x470   : > { %3915 = vmatprep.subr.bf16.mxu1 %v5578_v56  ;;  %v5663_v56 = vld [vmem:[%s7435_s9 + $0x40] ss:$8 sps:$4 sm:$0xff]  }
 0x472   : > { %3752 = vmatpush1.bf16.msra.mxu0 %v5573_v54  ;;  %v5668_v54 = vld [vmem:[%s7435_s9 + $0x54] ss:$8 sps:$4 sm:$0xff]  }
 0x473   : > { %3916 = vmatpush1.bf16.msra.mxu1 %v5576_v55  ;;  %3753 = vmatprep.subr.bf16.mxu0 %v5581_v57  ;;  %v5666_v55 = vld [vmem:[%s7435_s9 + $0x50] ss:$8 sps:$4 sm:$0xff]   ;;  %v5671_v57 = vld [vmem:[%s7435_s9 + $0x64] ss:$8 sps:$4 sm:$0xff]  }
 0x474   : > { %3917 = vmatprep.subr.bf16.mxu1 %v5584_v58  ;;  %v5669_v58 = vld [vmem:[%s7435_s9 + $0x60] ss:$8 sps:$4 sm:$0xff]  }
 0x476   : > { %3754 = vmatpush1.bf16.msra.mxu0 %v5579_v59  ;;  %v5674_v59 = vld [vmem:[%s7435_s9 + $0x74] ss:$8 sps:$4 sm:$0xff]  }
 0x477   : > { %3918 = vmatpush1.bf16.msra.mxu1 %v5582_v61  ;;  %3755 = vmatprep.subr.bf16.mxu0 %v5587_v62  ;;  %v5672_v61 = vld [vmem:[%s7435_s9 + $0x70] ss:$8 sps:$4 sm:$0xff]   ;;  %v5677_v62 = vld [vmem:[%s7435_s9 + $0x84] ss:$8 sps:$4 sm:$0xff]  }
 0x478   : > { %3919 = vmatprep.subr.bf16.mxu1 %v5590_v63  ;;  %v5675_v63 = vld [vmem:[%s7435_s9 + $0x80] ss:$8 sps:$4 sm:$0xff]  }
 0x47a   : > { %3756 = vmatpush1.bf16.msra.mxu0 %v5585_v2  ;;  %v5680_v2 = vld [vmem:[%s7435_s9 + $0x94] ss:$8 sps:$4 sm:$0xff]  }
 0x47b   : > { %3920 = vmatpush1.bf16.msra.mxu1 %v5588_v60  ;;  %3757 = vmatprep.subr.bf16.mxu0 %v5593_v3  ;;  %v5678_v60 = vld [vmem:[%s7435_s9 + $0x90] ss:$8 sps:$4 sm:$0xff]   ;;  %v5683_v3 = vld [vmem:[%s7435_s9 + $0xa4] ss:$8 sps:$4 sm:$0xff]  }
 0x47c   : > { %3921 = vmatprep.subr.bf16.mxu1 %v5596_v4  ;;  %v5681_v4 = vld [vmem:[%s7435_s9 + $0xa0] ss:$8 sps:$4 sm:$0xff]  }
 0x47e   : > { %3758 = vmatpush1.bf16.msra.mxu0 %v5591_v5  ;;  %v5686_v5 = vld [vmem:[%s7435_s9 + $0xb4] ss:$8 sps:$4 sm:$0xff]  }
 0x47f   : > { %3922 = vmatpush1.bf16.msra.mxu1 %v5594_v6  ;;  %3759 = vmatprep.subr.bf16.mxu0 %v5599_v7  ;;  %v5684_v6 = vld [vmem:[%s7435_s9 + $0xb0] ss:$8 sps:$4 sm:$0xff]   ;;  %v5689_v7 = vld [vmem:[%s7435_s9 + $0xc4] ss:$8 sps:$4 sm:$0xff]  }
 0x480   : > { %3923 = vmatprep.subr.bf16.mxu1 %v5602_v8  ;;  %v5687_v8 = vld [vmem:[%s7435_s9 + $0xc0] ss:$8 sps:$4 sm:$0xff]  }
 0x482   : > { %3760 = vmatpush1.bf16.msra.mxu0 %v5597_v9  ;;  %v5692_v9 = vld [vmem:[%s7435_s9 + $0xd4] ss:$8 sps:$4 sm:$0xff]  }
 0x483   : > { %3924 = vmatpush1.bf16.msra.mxu1 %v5600_v10  ;;  %3761 = vmatprep.subr.bf16.mxu0 %v5605_v33  ;;  %v5690_v10 = vld [vmem:[%s7435_s9 + $0xd0] ss:$8 sps:$4 sm:$0xff]   ;;  %v5695_v33 = vld [vmem:[%s7435_s9 + $0xe4] ss:$8 sps:$4 sm:$0xff]  }
 0x484   : > { %3925 = vmatprep.subr.bf16.mxu1 %v5608_v12  ;;  %v5693_v12 = vld [vmem:[%s7435_s9 + $0xe0] ss:$8 sps:$4 sm:$0xff]  }
 0x486   : > { %3762 = vmatpush1.bf16.msra.mxu0 %v5603_v45  ;;  %v5698_v45 = vld [vmem:[%s7435_s9 + $0xf4] ss:$8 sps:$4 sm:$0xff]  }
 0x487   : > { %3926 = vmatpush1.bf16.msra.mxu1 %v5606_v1  ;;  %3763 = vmatprep.subr.bf16.mxu0 %v5611_v23  ;;  %v5696_v1 = vld [vmem:[%s7435_s9 + $0xf0] ss:$8 sps:$4 sm:$0xff]   ;;  %v5701_v23 = vld [vmem:[%s7435_s9 + $0x104] ss:$8 sps:$4 sm:$0xff]  }
 0x488   : > { %3927 = vmatprep.subr.bf16.mxu1 %v5614_v21  ;;  %v5747_v21 = vld [vmem:[%s7437_s11 + $0x40] sm:$0xff]  }
 0x48a   : > { %3764 = vmatpush1.bf16.msra.mxu0 %v5609_v52  ;;  %v5748_v52 = vld [vmem:[%s7437_s11] sm:$0xff]  }
 0x48b   : > { %3928 = vmatpush1.bf16.msra.mxu1 %v5612_v17  ;;  %3765 = vmatprep.subr.bf16.mxu0 %v5617_v18  ;;  %v5749_v17 = vld [vmem:[%s7437_s11 + $0x48] sm:$0xff]  }
 0x48c   : > { %3929 = vmatprep.subr.bf16.mxu1 %v5620_v19  ;;  %v5750_v18 = vld [vmem:[%s7437_s11 + $0x8] sm:$0xff]   ;;  %v5751_v19 = vld [vmem:[%s7437_s11 + $0x50] sm:$0xff]  }
 0x48e   : > { %3766 = vmatpush1.bf16.msra.mxu0 %v5615_v50  ;;  %v5752_v50 = vld [vmem:[%s7437_s11 + $0x10] sm:$0xff]  }
 0x48f   : > { %3930 = vmatpush1.bf16.msra.mxu1 %v5618_v20  ;;  %3767 = vmatprep.subr.bf16.mxu0 %v5623_v22  ;;  %v5753_v20 = vld [vmem:[%s7437_s11 + $0x58] sm:$0xff]  }
 0x490   : > { %3931 = vmatprep.subr.bf16.mxu1 %v5626_v16  ;;  %v5754_v22 = vld [vmem:[%s7437_s11 + $0x18] sm:$0xff]   ;;  %v5755_v16 = vld [vmem:[%s7437_s11 + $0x60] sm:$0xff]  }
 0x492   : > { %3768 = vmatpush1.bf16.msra.mxu0 %v5621_v25  ;;  %v5756_v25 = vld [vmem:[%s7437_s11 + $0x20] sm:$0xff]  }
 0x493   : > { %3932 = vmatpush1.bf16.msra.mxu1 %v5624_v43  ;;  %3769 = vmatprep.subr.bf16.mxu0 %v5629_v26  ;;  %v5757_v43 = vld [vmem:[%s7437_s11 + $0x68] sm:$0xff]  }
 0x494   : > { %3933 = vmatprep.subr.bf16.mxu1 %v5632_v13  ;;  %v5758_v26 = vld [vmem:[%s7437_s11 + $0x28] sm:$0xff]   ;;  %v7284_v13 = vld [vmem:[%s7434_s8] sm:$0xf] }
 0x496   : > { %3770 = vmatpush1.bf16.msra.mxu0 %v5627_v27  ;;  %v3608_v27 = vsub.s32 1, %v6477_v15 }
 0x497   : > { %3934 = vmatpush1.bf16.msra.mxu1 %v5630_v28  ;;  %3771 = vmatprep.subr.bf16.mxu0 %v5635_v29  ;;  %v3616_v28 = vsub.s32 3, %v6477_v15  ;;  %v3605_v29 = vrot.slane %v7284_v13, %v6544_v11 }
 0x498   : > { %3935 = vmatprep.subr.bf16.mxu1 %v5638_v46  ;;  %v3609_v46 = vrot.slane %v7284_v13, %v3608_v27 }
 0x49a   : > { %3772 = vmatpush1.bf16.msra.mxu0 %v5633_v48  ;;  %v3617_v48 = vrot.slane %v7284_v13, %v3616_v28 }
 0x49b   : > { %3936 = vmatpush1.bf16.msra.mxu1 %v5636_v30  ;;  %3773 = vmatprep.subr.bf16.mxu0 %v5641_v31 }
 0x49c   : > { %3937 = vmatprep.subr.bf16.mxu1 %v5644_v32 }
 0x49e   : > { %3774 = vmatpush1.bf16.msra.mxu0 %v5639_v34 }
 0x49f   : > { %3938 = vmatpush1.bf16.msra.mxu1 %v5642_v35  ;;  %3775 = vmatprep.subr.bf16.mxu0 %v5647_v36 }
 0x4a0   : > { %3939 = vmatprep.subr.bf16.mxu1 %v5650_v37 }
 0x4a2   : > { %3776 = vmatpush1.bf16.msra.mxu0 %v5645_v0 }
 0x4a3   : > { %3940 = vmatpush1.bf16.msra.mxu1 %v5648_v38  ;;  %4354 = vmatprep.subr.bf16.mxu0 %v5653_v39 }
 0x4a4   : > { %5120 = vmatprep.subr.bf16.mxu1 %v5747_v21  ;;  %v5738_v21 = vld [vmem:[%s7435_s9 + $0x1d0] ss:$8 sps:$4 sm:$0xff]  }
 0x4a5   : > { %3778 = vmatmul.mubr.bf16.vlgmr.msra.gmra.mrb[64].mxu0 %v2062_v41 }
 0x4a6   : > { %3942 = vmatmul.mubr.bf16.vlgmr.msra.gmra.mrb[96].mxu1 %v2062_v41  ;;  %4355 = vmatpush1.bf16.msra.mxu0 %v5651_v40 }
 0x4a7   : > { %4356 = vmatprep.subr.bf16.mxu0 %v5656_v42  ;;  %5121 = vmatpush3.bf16.msra.mxu1 %v5748_v52  ;;  %v3613_v52 = vrot.slane %v7284_v13, %v6541_v24  ;;  %v5744_v24 = vld [vmem:[%s7435_s9 + $0x1f0] ss:$8 sps:$4 sm:$0xff]   ;;  %v4022_v13 = vld [vmem:[%s7436_s10] sm:$0x3] }
 0x4a8   : > { %5122 = vmatprep.subr.bf16.mxu1 %v5749_v17  ;;  %v5743_v17 = vld [vmem:[%s7435_s9 + $0x1e4] ss:$8 sps:$4 sm:$0xff]   ;;  %v4347_v28 = vrot.slane %v4022_v13, %v6544_v11  ;;  %v4472_v11 = vld [vmem:[%s7438_s12] sm:$0x1] }
 0x4aa   : > { %4357 = vmatpush1.bf16.msra.mxu0 %v5654_v49 }
 0x4ab   : > { %4358 = vmatprep.subr.bf16.mxu0 %v5659_v44  ;;  %5123 = vmatpush3.bf16.msra.mxu1 %v5750_v18  ;;  %v5741_v18 = vld [vmem:[%s7435_s9 + $0x1e0] ss:$8 sps:$4 sm:$0xff]  }
 0x4ac   : > { %5124 = vmatprep.subr.bf16.mxu1 %v5751_v19 }
 0x4ae   : > { %4359 = vmatpush1.bf16.msra.mxu0 %v5657_v14  ;;  %v5699_v14 = vld [vmem:[%s7435_s9 + $0x100] ss:$8 sps:$4 sm:$0xff]  }
 0x4af   : > { %4360 = vmatprep.subr.bf16.mxu0 %v5662_v47  ;;  %5125 = vmatpush3.bf16.msra.mxu1 %v5752_v50  ;;  %v5746_v50 = vld [vmem:[%s7435_s9 + $0x1f4] ss:$8 sps:$4 sm:$0xff]  }
 0x4b0   : > { %5126 = vmatprep.subr.bf16.mxu1 %v5753_v20 }
 0x4b2   : > { %4361 = vmatpush1.bf16.msra.mxu0 %v5660_v51  ;;  %v5704_v51 = vld [vmem:[%s7435_s9 + $0x114] ss:$8 sps:$4 sm:$0xff]  }
 0x4b3   : > { %4362 = vmatprep.subr.bf16.mxu0 %v5665_v53  ;;  %5127 = vmatpush3.bf16.msra.mxu1 %v5754_v22 }
 0x4b4   : > { %5128 = vmatprep.subr.bf16.mxu1 %v5755_v16  ;;  %v5759_v16 = vld [vmem:[%s7437_s11 + $0x70] sm:$0xff]  }
 0x4b6   : > { %4363 = vmatpush1.bf16.msra.mxu0 %v5663_v56  ;;  %v5702_v56 = vld [vmem:[%s7435_s9 + $0x110] ss:$8 sps:$4 sm:$0xff]  }
 0x4b7   : > { %4364 = vmatprep.subr.bf16.mxu0 %v5668_v54  ;;  %5129 = vmatpush3.bf16.msra.mxu1 %v5756_v25  ;;  %v5707_v54 = vld [vmem:[%s7435_s9 + $0x124] ss:$8 sps:$4 sm:$0xff]   ;;  %v5760_v25 = vld [vmem:[%s7437_s11 + $0x30] sm:$0xff]  }
 0x4b8   : > { %5130 = vmatprep.subr.bf16.mxu1 %v5757_v43  ;;  %v5761_v43 = vld [vmem:[%s7437_s11 + $0x78] sm:$0xff]  }
 0x4ba   : > { %4365 = vmatpush1.bf16.msra.mxu0 %v5666_v55  ;;  %v5705_v55 = vld [vmem:[%s7435_s9 + $0x120] ss:$8 sps:$4 sm:$0xff]  }
 0x4bb   : > { %4366 = vmatprep.subr.bf16.mxu0 %v5671_v57  ;;  %5131 = vmatpush3.bf16.msra.mxu1 %v5758_v26  ;;  %v5710_v57 = vld [vmem:[%s7435_s9 + $0x134] ss:$8 sps:$4 sm:$0xff]  }
 0x4bc   : > { %5132 = vmatprep.subr.bf16.mxu1 %v5759_v16  ;;  %v5762_v26 = vld [vmem:[%s7437_s11 + $0x38] sm:$0xff]  }
 0x4be   : > { %4367 = vmatpush1.bf16.msra.mxu0 %v5669_v58  ;;  %v5708_v58 = vld [vmem:[%s7435_s9 + $0x130] ss:$8 sps:$4 sm:$0xff]  }
 0x4bf   : > { %4368 = vmatprep.subr.bf16.mxu0 %v5674_v59  ;;  %v5713_v59 = vld [vmem:[%s7435_s9 + $0x144] ss:$8 sps:$4 sm:$0xff]   ;;  %5133 = vmatpush3.bf16.msra.mxu1 %v5760_v25 }
 0x4c0   : > { %5134 = vmatprep.subr.bf16.mxu1 %v5761_v43 }
 0x4c2   : > { %4369 = vmatpush1.bf16.msra.mxu0 %v5672_v61  ;;  %v5711_v61 = vld [vmem:[%s7435_s9 + $0x140] ss:$8 sps:$4 sm:$0xff]  }
 0x4c3   : > { %4370 = vmatprep.subr.bf16.mxu0 %v5677_v62  ;;  %v5716_v62 = vld [vmem:[%s7435_s9 + $0x154] ss:$8 sps:$4 sm:$0xff]   ;;  %5135 = vmatpush3.bf16.msra.mxu1 %v5762_v26 }
 0x4c6   : > { %4371 = vmatpush1.bf16.msra.mxu0 %v5675_v63  ;;  %v5714_v63 = vld [vmem:[%s7435_s9 + $0x150] ss:$8 sps:$4 sm:$0xff]  }
 0x4c7   : > { %4372 = vmatprep.subr.bf16.mxu0 %v5680_v2  ;;  %v5719_v2 = vld [vmem:[%s7435_s9 + $0x164] ss:$8 sps:$4 sm:$0xff]  }
 0x4ca   : > { %4373 = vmatpush1.bf16.msra.mxu0 %v5678_v60  ;;  %v5717_v60 = vld [vmem:[%s7435_s9 + $0x160] ss:$8 sps:$4 sm:$0xff]  }
 0x4cb   : > { %4374 = vmatprep.subr.bf16.mxu0 %v5683_v3  ;;  %v5722_v3 = vld [vmem:[%s7435_s9 + $0x174] ss:$8 sps:$4 sm:$0xff]  }
 0x4ce   : > { %4375 = vmatpush1.bf16.msra.mxu0 %v5681_v4  ;;  %v5720_v4 = vld [vmem:[%s7435_s9 + $0x170] ss:$8 sps:$4 sm:$0xff]  }
 0x4cf   : > { %4376 = vmatprep.subr.bf16.mxu0 %v5686_v5  ;;  %v5725_v5 = vld [vmem:[%s7435_s9 + $0x184] ss:$8 sps:$4 sm:$0xff]  }
 0x4d2   : > { %4377 = vmatpush1.bf16.msra.mxu0 %v5684_v6  ;;  %v5723_v6 = vld [vmem:[%s7435_s9 + $0x180] ss:$8 sps:$4 sm:$0xff]  }
 0x4d3   : > { %4378 = vmatprep.subr.bf16.mxu0 %v5689_v7  ;;  %v5728_v7 = vld [vmem:[%s7435_s9 + $0x194] ss:$8 sps:$4 sm:$0xff]  }
 0x4d6   : > { %4379 = vmatpush1.bf16.msra.mxu0 %v5687_v8  ;;  %v5726_v8 = vld [vmem:[%s7435_s9 + $0x190] ss:$8 sps:$4 sm:$0xff]  }
 0x4d7   : > { %4380 = vmatprep.subr.bf16.mxu0 %v5692_v9  ;;  %v5731_v9 = vld [vmem:[%s7435_s9 + $0x1a4] ss:$8 sps:$4 sm:$0xff]  }
 0x4da   : > { %4381 = vmatpush1.bf16.msra.mxu0 %v5690_v10  ;;  %v5729_v10 = vld [vmem:[%s7435_s9 + $0x1a0] ss:$8 sps:$4 sm:$0xff]  }
 0x4db   : > { %4382 = vmatprep.subr.bf16.mxu0 %v5695_v33  ;;  %v5734_v33 = vld [vmem:[%s7435_s9 + $0x1b4] ss:$8 sps:$4 sm:$0xff]  }
 0x4de   : > { %4383 = vmatpush1.bf16.msra.mxu0 %v5693_v12  ;;  %v5732_v12 = vld [vmem:[%s7435_s9 + $0x1b0] ss:$8 sps:$4 sm:$0xff]  }
 0x4df   : > { %4384 = vmatprep.subr.bf16.mxu0 %v5698_v45  ;;  %v5737_v45 = vld [vmem:[%s7435_s9 + $0x1c4] ss:$8 sps:$4 sm:$0xff]  }
 0x4e2   : > { %4385 = vmatpush1.bf16.msra.mxu0 %v5696_v1  ;;  %v5735_v1 = vld [vmem:[%s7435_s9 + $0x1c0] ss:$8 sps:$4 sm:$0xff]  }
 0x4e3   : > { %4395 = vmatprep.subr.bf16.mxu0 %v5701_v23  ;;  %v5740_v23 = vld [vmem:[%s7435_s9 + $0x1d4] ss:$8 sps:$4 sm:$0xff]  }
 0x578   : > { %v3779_v30 = vpop.f32.mrb[64].mxu0 }
 0x579   : > { %v5200_v31 = vadd.f32 %v3779_v30, %v3605_v29  ;;  %v7294_v32 = vpop.f32.mrb[96].mxu1  ;;  %v3781_v34 = vpop.f32.mrb[65].mxu0  ;;  %v4351_v29 = vrot.slane %v4022_v13, %v3608_v27 }
 0x57a   : > { %v5201_v35 = vadd.f32 %v3781_v34, %v3609_v46  ;;  %v3945_v36 = vpop.f32.mrb[97].mxu1  ;;  %v3783_v37 = vpop.f32.mrb[66].mxu0  ;;  %v5202_v19 = vadd.f32 %v7294_v32, %v3613_v52 }
 0x57b   : > { %v3950_v0 = vmax.f32 %v5200_v31, 0.0  ;;  %v5203_v38 = vadd.f32 %v3945_v36, %v3617_v48  ;;  %v3947_v39 = vpop.f32.mrb[98].mxu1  ;;  %v3784_v40 = vpop.f32.mrb[67].mxu0 }
 0x57c   : > { %v3951_v41 = vmax.f32 %v5201_v35, 0.0  ;;  %v3948_v42 = vpop.f32.mrb[99].mxu1  ;;  %v3952_v20 = vmax.f32 %v5202_v19, 0.0 }
 0x57d   : > { %v3953_v49 = vmax.f32 %v5203_v38, 0.0  ;;  %v3954_v47 = vpack.c.bf16 %v3950_v0, %v3950_v0 }
 0x57e   : > { %v3955_v44 = vpack.c.bf16 %v3951_v41, %v3951_v41  ;;  %v3956_v22 = vpack.c.bf16 %v3952_v20, %v3952_v20 }
 0x57f   : > { %v3957_v53 = vpack.c.bf16 %v3953_v49, %v3953_v49 }
 0x580   : > { %4386 = vmatprep.mubr.bf16.mxu0 %v3955_v44 }
 0x581   : > { %4387 = vmatmul.mubr.bf16.vlgmr.msra.gmra.mrb[68].mxu0 %v3954_v47 }
 0x582   : > { %4396 = vmatpush1.bf16.msra.mxu0 %v5699_v14  ;;  %4427 = vmatprep.mubr.bf16.mxu0 %v3957_v53 }
 0x583   : > { %4397 = vmatprep.subr.bf16.mxu0 %v5704_v51 }
 0x586   : > { %4398 = vmatpush1.bf16.msra.mxu0 %v5702_v56 }
 0x587   : > { %4399 = vmatprep.subr.bf16.mxu0 %v5707_v54 }
 0x58a   : > { %4400 = vmatpush1.bf16.msra.mxu0 %v5705_v55 }
 0x58b   : > { %4401 = vmatprep.subr.bf16.mxu0 %v5710_v57 }
 0x58e   : > { %4402 = vmatpush1.bf16.msra.mxu0 %v5708_v58 }
 0x58f   : > { %4403 = vmatprep.subr.bf16.mxu0 %v5713_v59 }
 0x592   : > { %4404 = vmatpush1.bf16.msra.mxu0 %v5711_v61 }
 0x593   : > { %4405 = vmatprep.subr.bf16.mxu0 %v5716_v62 }
 0x596   : > { %4406 = vmatpush1.bf16.msra.mxu0 %v5714_v63 }
 0x597   : > { %4407 = vmatprep.subr.bf16.mxu0 %v5719_v2 }
 0x59a   : > { %4408 = vmatpush1.bf16.msra.mxu0 %v5717_v60 }
 0x59b   : > { %4409 = vmatprep.subr.bf16.mxu0 %v5722_v3 }
 0x59e   : > { %4410 = vmatpush1.bf16.msra.mxu0 %v5720_v4 }
 0x59f   : > { %4411 = vmatprep.subr.bf16.mxu0 %v5725_v5 }
 0x5a2   : > { %4412 = vmatpush1.bf16.msra.mxu0 %v5723_v6 }
 0x5a3   : > { %4413 = vmatprep.subr.bf16.mxu0 %v5728_v7 }
 0x5a6   : > { %4414 = vmatpush1.bf16.msra.mxu0 %v5726_v8 }
 0x5a7   : > { %4415 = vmatprep.subr.bf16.mxu0 %v5731_v9 }
 0x5aa   : > { %4416 = vmatpush1.bf16.msra.mxu0 %v5729_v10 }
 0x5ab   : > { %4417 = vmatprep.subr.bf16.mxu0 %v5734_v33 }
 0x5ae   : > { %4418 = vmatpush1.bf16.msra.mxu0 %v5732_v12 }
 0x5af   : > { %4419 = vmatprep.subr.bf16.mxu0 %v5737_v45 }
 0x5b2   : > { %4420 = vmatpush1.bf16.msra.mxu0 %v5735_v1 }
 0x5b3   : > { %4421 = vmatprep.subr.bf16.mxu0 %v5740_v23 }
 0x5b6   : > { %4422 = vmatpush1.bf16.msra.mxu0 %v5738_v21 }
 0x5b7   : > { %4423 = vmatprep.subr.bf16.mxu0 %v5743_v17 }
 0x5ba   : > { %4424 = vmatpush1.bf16.msra.mxu0 %v5741_v18 }
 0x5bb   : > { %4425 = vmatprep.subr.bf16.mxu0 %v5746_v50 }
 0x5be   : > { %4426 = vmatpush1.bf16.msra.mxu0 %v5744_v24 }
 0x5c1   : > { %4428 = vmatmul.mubr.bf16.vlgmr.msra.gmra.mrb[68].mxu0 %v3956_v22 }
 0x694   : > { %v4429_v46 = vpop.f32.mrb[68].mxu0 }
 0x695   : > { %v5204_v48 = vadd.f32 %v4429_v46, %v4347_v28  ;;  %v4431_v30 = vpop.f32.mrb[69].mxu0 }
 0x696   : > { %v5205_v31 = vadd.f32 %v4431_v30, %v4351_v29  ;;  %v4433_v32 = vpop.f32.mrb[70].mxu0 }
 0x697   : > { %v4436_v34 = vmax.f32 %v5204_v48, 0.0  ;;  %v4434_v35 = vpop.f32.mrb[71].mxu0 }
 0x698   : > { %v4437_v36 = vmax.f32 %v5205_v31, 0.0 }
 0x699   : > { %v4438_v0 = vpack.c.bf16 %v4436_v34, %v4436_v34 }
 0x69a   : > { %v4439_v37 = vpack.c.bf16 %v4437_v36, %v4437_v36 }
 0x69c   : > { %4601 = vmatprep.mubr.bf16.mxu1 %v4439_v37 }
 0x69d   : > { %4602 = vmatmul.mubr.bf16.vlgmr.msra.gmra.mrb[100].mxu1 %v4438_v0 }
 0x770   : > { %v5136_v38 = vpop.f32.mrb[100].mxu1 }
 0x771   : > { %v5137_v15 = vpop.f32.mrb[101].mxu1 }
 0x772   : > { %v5138_v27 = vadd.f32 %v5137_v15, %v5136_v38  ;;  %v5139_v39 = vpop.f32.mrb[102].mxu1 }
 0x773   : > { %v5140_v40 = vpop.f32.mrb[103].mxu1 }
 0x774   : > { %v4604_v41 = vadd.f32 %v5138_v27, %v4472_v11 }
 0x776   : > { %4610 = vst.msk [vmem:[%s456_s21] sm:$0x1] %vm4609_vm2, %v4604_v41 }
 0x777 PF: > { %s23_s27 = sadd.s32 1, %s5785_s27   ;;  %s7454_s25 = smov %s5781_s26 }
 0x778   : > { %p20_p5 = scmp.ge.s32.totalorder %s23_s27, 4   ;;  %s7455_s26 = smov %s7457_s28 }
 0x77a   :  { %22 = sbr.rel (!%p20_p5) target bundleno = 2 (0x2), region = 110 }

</bundles_post_ra>
